<compile_context>
chip_gen: v7x
topology: tpu7x:2x2x1
jax: 0.10.0
libtpu: 0.0.40
codegen_flags: <defaults>
</compile_context>

<pallas_src>
import functools
import math

import jax
import jax.numpy as jnp
from jax.experimental import pallas as pl
from jax.experimental.pallas import tpu as pltpu


def _round_up(x, m):
    return ((x + m - 1) // m) * m


def _attention_kernel(q_ref, kproj_ref, v_ref, sbias_ref, w_out_ref, b_out_ref,
                      out_ref, attn_ref, *, sqrt_half):
    # Ref shapes (leading batch dim squeezed by the BlockSpecs):
    #   q_ref    : (TQ, C)  bf16       kproj_ref : (C, Tk) bf16
    #   v_ref    : (Tk, E)  bf16       sbias_ref : (1, Tk) f32
    #   w_out    : (E, C)   bf16       b_out     : (1, C)  f32
    #   out_ref  : (TQ, C)             attn_ref  : (TQ, Tk)
    q = q_ref[...]                                          # native (bf16) for MXU

    # scores = in_proj(q) @ keys, fused in the wrapper as q @ K' + (b_in @ keys).
    scores = jnp.dot(q, kproj_ref[...], preferred_element_type=jnp.float32)
    scores = scores + sbias_ref[...]                        # (1, Tk) f32 broadcast

    # TODO(synk): optional `mask` / `last_attended` windowed masking (-inf fill
    # before the row max); the module defaults mask=None, last_attended=None.

    # Row softmax over the key axis (f32 math; v5e has no bf16 VPU/EUP path).
    m = jnp.max(scores, axis=-1, keepdims=True)
    p = jnp.exp(scores - m)
    denom = jnp.sum(p, axis=-1, keepdims=True)
    inv = pl.reciprocal(denom, approx=True)                 # EUP slot
    inv = inv * (2.0 - denom * inv)                         # one Newton step -> ~f32
    attn = p * inv
    attn_ref[...] = attn.astype(attn_ref.dtype)

    # TODO(synk): F.dropout on attn (module assumed in eval mode -> identity).

    # context = attn @ values ; cast attn down so bf16 values run the MXU full-rate.
    ctx = jnp.dot(attn.astype(v_ref.dtype), v_ref[...],
                  preferred_element_type=jnp.float32)

    # out_projection + residual.  w_out already carries sqrt(T_k)*sqrt(0.5) and
    # b_out carries sqrt(0.5); only the residual needs the sqrt(0.5) scale here.
    proj = jnp.dot(ctx.astype(w_out_ref.dtype), w_out_ref[...],
                   preferred_element_type=jnp.float32)
    out = proj + b_out_ref[...] + q.astype(jnp.float32) * sqrt_half
    out_ref[...] = out.astype(out_ref.dtype)


def _select_tq(tq_tile, Tq, Tk, C, E, B, cd_bytes, out_bytes, attn_bytes,
               budget_bytes):
    """Pick the largest tq <= tq_tile whose per-step working set fits the budget."""
    tq = max(8, min(_round_up(tq_tile, 8), _round_up(Tq, 8)))

    def est(t):
        e = 2 * t * C * cd_bytes          # query tile (double-buffered)
        e += 2 * t * C * out_bytes        # out tile
        e += 2 * t * Tk * attn_bytes      # attn tile (largest writeback stream)
        e += 2 * C * Tk * cd_bytes        # K' (constant index, still 2-buffered)
        e += 2 * Tk * E * cd_bytes        # values
        e += 2 * E * C * cd_bytes         # w_out
        e += 2 * Tk * 4 + 2 * C * 4       # s_bias, b_out
        e += 3 * t * Tk * 4               # f32 intermediates: scores / p / attn
        e += 2 * t * max(C, E) * 4        # ctx / proj
        return e

    while tq > 128 and est(tq) > budget_bytes:
        tq //= 2
    # v7x has 2 TensorCores: when B == 1 make sure both get t-steps.
    while B == 1 and tq > 128 and pl.cdiv(Tq, tq) < 2:
        tq //= 2
    return tq, est(tq)


def attention_layer(query, keys, values, w_in, b_in, w_out, b_out,
                    *, tq_tile=256, attn_dtype=jnp.bfloat16,
                    compute_dtype=jnp.bfloat16,
                    vmem_budget_bytes=28 * 1024 * 1024):
    B, Tq, C = query.shape
    _, E, Tk = keys.shape
    assert values.shape == (B, Tk, E)

    scale = Tk * math.sqrt(1.0 / Tk)      # == sqrt(T_k)
    sqrt_half = math.sqrt(0.5)

    f32 = jnp.float32
    # --- wrapper-side algebraic fusion (once per batch, f32 for precision) ----
    # in_proj(q) @ keys  ==  q @ (w_in @ keys) + (b_in @ keys)
    k_proj = jnp.einsum("ce,bek->bck", w_in.astype(f32), keys.astype(f32))
    s_bias = jnp.einsum("e,bek->bk", b_in[0].astype(f32),
                        keys.astype(f32))[:, None, :]        # (B, 1, Tk) f32
    # Fold the static scales into the (tiny) projection weight / bias.
    w_out_f = (w_out.astype(f32) * (scale * sqrt_half)).astype(compute_dtype)
    b_out_f = (b_out.astype(f32) * sqrt_half)                # (1, C) f32

    q_c = query.astype(compute_dtype)
    k_proj_c = k_proj.astype(compute_dtype)
    values_c = values.astype(compute_dtype)

    cd_bytes = jnp.dtype(compute_dtype).itemsize
    out_bytes = jnp.dtype(query.dtype).itemsize
    attn_bytes = jnp.dtype(attn_dtype).itemsize

    tq, vmem_est = _select_tq(tq_tile, Tq, Tk, C, E, B,
                              cd_bytes, out_bytes, attn_bytes, vmem_budget_bytes)

    # Pad T_q up to a tile multiple (padded rows give a valid softmax and are
    # sliced off below) instead of collapsing to one giant block.
    Tq_pad = _round_up(Tq, tq)
    if Tq_pad != Tq:
        q_c = jnp.pad(q_c, ((0, 0), (0, Tq_pad - Tq), (0, 0)))

    grid = (B, Tq_pad // tq)
    kernel = functools.partial(_attention_kernel, sqrt_half=sqrt_half)

    # Advisory cost hint for the XLA scheduler around the custom call.
    flops = 2 * B * Tq_pad * (C * Tk + Tk * E + E * C)
    bytes_accessed = int(
        q_c.size * cd_bytes + k_proj_c.size * cd_bytes + values_c.size * cd_bytes
        + s_bias.size * 4 + w_out_f.size * cd_bytes + b_out_f.size * 4
        + B * Tq_pad * C * out_bytes + B * Tq_pad * Tk * attn_bytes)

    vmem_limit = int(min(64 * 1024 * 1024, max(32 * 1024 * 1024, 2 * vmem_est)))

    out, attn = pl.pallas_call(
        kernel,
        out_shape=(
            jax.ShapeDtypeStruct((B, Tq_pad, C), query.dtype),
            jax.ShapeDtypeStruct((B, Tq_pad, Tk), attn_dtype),
        ),
        grid=grid,
        in_specs=[
            # query tile: advances along the Tq grid axis.
            pl.BlockSpec((None, tq, C), lambda b, t: (b, t, 0)),
            # K' / values / s_bias: constant block index along t -> stay
            # VMEM-resident across the inner Tq iterations per batch element.
            pl.BlockSpec((None, C, Tk), lambda b, t: (b, 0, 0)),
            pl.BlockSpec((None, Tk, E), lambda b, t: (b, 0, 0)),
            pl.BlockSpec((None, 1, Tk), lambda b, t: (b, 0, 0)),
            # folded projection weight / bias: constant-index, re-used every step.
            pl.BlockSpec((E, C), lambda b, t: (0, 0)),
            pl.BlockSpec((1, C), lambda b, t: (0, 0)),
        ],
        out_specs=(
            pl.BlockSpec((None, tq, C), lambda b, t: (b, t, 0)),
            pl.BlockSpec((None, tq, Tk), lambda b, t: (b, t, 0)),
        ),
        compiler_params=pltpu.CompilerParams(
            dimension_semantics=("parallel", "parallel"),
            vmem_limit_bytes=vmem_limit),
        cost_estimate=pl.CostEstimate(
            flops=flops,
            transcendentals=B * Tq_pad * Tk,
            bytes_accessed=bytes_accessed),
    )(q_c, k_proj_c, values_c, s_bias, w_out_f, b_out_f)

    if Tq_pad != Tq:
        out = out[:, :Tq]
        attn = attn[:, :Tq]
    return out, attn


def attention_reference(query, keys, values, w_in, b_in, w_out, b_out):
    # Pure-JAX f32 reference mirroring the PyTorch forward (eval mode, no mask).
    x = jnp.einsum("btc,ce->bte", query, w_in) + b_in[0]
    s = jnp.einsum("bte,bek->btk", x, keys)
    attn = jax.nn.softmax(s, axis=-1)
    Tk = values.shape[1]
    ctx = jnp.einsum("btk,bke->bte", attn, values) * (Tk * math.sqrt(1.0 / Tk))
    out = (jnp.einsum("bte,ec->btc", ctx, w_out) + b_out[0] + query) * math.sqrt(0.5)
    return out, attn


if __name__ == "__main__":
    # Small, lane-dense shapes (last dims multiples of 128 -> unmasked vector
    # stores).  Tq=384 with tq_tile=256 exercises the padding + slicing path
    # (padded to 512, grid = (2, 2)).
    B, Tq, Tk = 2, 384, 128
    conv_channels, embed_dim = 128, 128

    key = jax.random.PRNGKey(0)
    kq, kk, kv, k1, k2, k3, k4 = jax.random.split(key, 7)

    query = jax.random.normal(kq, (B, Tq, conv_channels), dtype=jnp.float32)
    keys = jax.random.normal(kk, (B, embed_dim, Tk), dtype=jnp.float32)
    values = jax.random.normal(kv, (B, Tk, embed_dim), dtype=jnp.float32)

    w_in = jax.random.normal(k1, (conv_channels, embed_dim), dtype=jnp.float32) * 0.03
    b_in = jax.random.normal(k2, (1, embed_dim), dtype=jnp.float32) * 0.03
    w_out = jax.random.normal(k3, (embed_dim, conv_channels), dtype=jnp.float32) * 0.03
    b_out = jax.random.normal(k4, (1, conv_channels), dtype=jnp.float32) * 0.03

    out, attn = attention_layer(query, keys, values, w_in, b_in, w_out, b_out)
    out = jax.block_until_ready(out)
    attn = jax.block_until_ready(attn)

    ref_out, ref_attn = attention_reference(query, keys, values,
                                            w_in, b_in, w_out, b_out)

    # bf16 MXU operands + bf16 attn store -> relaxed tolerances vs. the f32 ref.
    assert out.shape == (B, Tq, conv_channels)
    assert attn.shape == (B, Tq, Tk)
    assert jnp.allclose(out, ref_out, atol=1e-1, rtol=5e-2)
    assert jnp.allclose(attn.astype(jnp.float32), ref_attn, atol=3e-2)

    print("KERNEL_OK")
</pallas_src>

<mosaic_0001>
module attributes {stable_mosaic.version = 11 : i64} {
  func.func @_attention_kernel(%arg0: i32, %arg1: i32, %arg2: memref<1x256x128xbf16, #tpu.memory_space<vmem>>, %arg3: memref<1x128x128xbf16, #tpu.memory_space<vmem>>, %arg4: memref<1x128x128xbf16, #tpu.memory_space<vmem>>, %arg5: memref<1x1x128xf32, #tpu.memory_space<vmem>>, %arg6: memref<128x128xbf16, #tpu.memory_space<vmem>>, %arg7: memref<1x128xf32, #tpu.memory_space<vmem>>, %arg8: memref<1x256x128xf32, #tpu.memory_space<vmem>>, %arg9: memref<1x256x128xbf16, #tpu.memory_space<vmem>>) attributes {dimension_semantics = [#tpu.dimension_semantics<parallel>, #tpu.dimension_semantics<parallel>], iteration_bounds = array<i64: 2, 2>, scalar_prefetch = 0 : i64, scratch_operands = 0 : i64, tpu.core_type = #tpu.core_type<tc>, window_params = [{transform_indices = @transform_0, window_bounds = array<i64: 1, 256, 128>}, {transform_indices = @transform_1, window_bounds = array<i64: 1, 128, 128>}, {transform_indices = @transform_2, window_bounds = array<i64: 1, 128, 128>}, {transform_indices = @transform_3, window_bounds = array<i64: 1, 1, 128>}, {pipeline_mode = #tpu.pipeline_mode<synchronous>, transform_indices = @transform_4, window_bounds = array<i64: 128, 128>}, {pipeline_mode = #tpu.pipeline_mode<synchronous>, transform_indices = @transform_5, window_bounds = array<i64: 1, 128>}, {transform_indices = @transform_6, window_bounds = array<i64: 1, 256, 128>}, {transform_indices = @transform_7, window_bounds = array<i64: 1, 256, 128>}]} {
    %c0 = arith.constant 0 : index
    %c0_0 = arith.constant 0 : index
    %c0_1 = arith.constant 0 : index
    %0 = vector.load %arg2[%c0, %c0_0, %c0_1] : memref<1x256x128xbf16, #tpu.memory_space<vmem>>, vector<1x256x128xbf16>
    %1 = vector.shape_cast %0 : vector<1x256x128xbf16> to vector<256x128xbf16>
    %c0_2 = arith.constant 0 : index
    %c0_3 = arith.constant 0 : index
    %c0_4 = arith.constant 0 : index
    %2 = vector.load %arg3[%c0_2, %c0_3, %c0_4] : memref<1x128x128xbf16, #tpu.memory_space<vmem>>, vector<1x128x128xbf16>
    %3 = vector.shape_cast %2 : vector<1x128x128xbf16> to vector<128x128xbf16>
    %cst = arith.constant dense<0.000000e+00> : vector<256x128xf32>
    %4 = tpu.matmul %1, %3, %cst {dimension_numbers = #tpu.dot_dimension_numbers<[1], [0], [0], [1], [0, 0, 1, 1], [], []>} : vector<256x128xbf16>, vector<128x128xbf16>, vector<256x128xf32> -> vector<256x128xf32>
    %c0_5 = arith.constant 0 : index
    %c0_6 = arith.constant 0 : index
    %c0_7 = arith.constant 0 : index
    %5 = vector.load %arg5[%c0_5, %c0_6, %c0_7] : memref<1x1x128xf32, #tpu.memory_space<vmem>>, vector<1x1x128xf32>
    %6 = vector.shape_cast %5 : vector<1x1x128xf32> to vector<1x128xf32>
    %7 = vector.broadcast %6 : vector<1x128xf32> to vector<256x128xf32>
    %8 = arith.addf %4, %7 : vector<256x128xf32>
    %cst_8 = arith.constant dense<0xFF800000> : vector<256xf32>
    %9 = vector.multi_reduction <maximumf>, %8, %cst_8 [1] : vector<256x128xf32> to vector<256xf32>
    %10 = vector.shape_cast %9 : vector<256xf32> to vector<256x1xf32>
    %11 = vector.broadcast %10 : vector<256x1xf32> to vector<256x128xf32>
    %12 = arith.subf %8, %11 : vector<256x128xf32>
    %13 = math.exp %12 : vector<256x128xf32>
    %cst_9 = arith.constant dense<0.000000e+00> : vector<256xf32>
    %14 = vector.multi_reduction <add>, %13, %cst_9 [1] : vector<256x128xf32> to vector<256xf32>
    %15 = vector.shape_cast %14 : vector<256xf32> to vector<256x1xf32>
    %16 = tpu.reciprocal %15 {approx = true} : vector<256x1xf32> -> vector<256x1xf32>
    %17 = arith.mulf %15, %16 : vector<256x1xf32>
    %cst_10 = arith.constant 2.000000e+00 : f32
    %18 = vector.broadcast %cst_10 : f32 to vector<256x1xf32>
    %19 = arith.subf %18, %17 : vector<256x1xf32>
    %20 = arith.mulf %16, %19 : vector<256x1xf32>
    %21 = vector.broadcast %20 : vector<256x1xf32> to vector<256x128xf32>
    %22 = arith.mulf %13, %21 : vector<256x128xf32>
    %23 = arith.truncf %22 : vector<256x128xf32> to vector<256x128xbf16>
    %c0_11 = arith.constant 0 : index
    %c0_12 = arith.constant 0 : index
    %c0_13 = arith.constant 0 : index
    %24 = vector.load %arg9[%c0_11, %c0_12, %c0_13] : memref<1x256x128xbf16, #tpu.memory_space<vmem>>, vector<1x256x128xbf16>
    %25 = vector.shape_cast %24 : vector<1x256x128xbf16> to vector<256x128xbf16>
    %26 = vector.shape_cast %23 : vector<256x128xbf16> to vector<1x256x128xbf16>
    tpu.vector_store %arg9[%c0_11, %c0_12, %c0_13], %26 {strides = array<i32>} : memref<1x256x128xbf16, #tpu.memory_space<vmem>>, vector<1x256x128xbf16>,
    %27 = arith.truncf %22 : vector<256x128xf32> to vector<256x128xbf16>
    %c0_14 = arith.constant 0 : index
    %c0_15 = arith.constant 0 : index
    %c0_16 = arith.constant 0 : index
    %28 = vector.load %arg4[%c0_14, %c0_15, %c0_16] : memref<1x128x128xbf16, #tpu.memory_space<vmem>>, vector<1x128x128xbf16>
    %29 = vector.shape_cast %28 : vector<1x128x128xbf16> to vector<128x128xbf16>
    %cst_17 = arith.constant dense<0.000000e+00> : vector<256x128xf32>
    %30 = tpu.matmul %27, %29, %cst_17 {dimension_numbers = #tpu.dot_dimension_numbers<[1], [0], [0], [1], [0, 0, 1, 1], [], []>} : vector<256x128xbf16>, vector<128x128xbf16>, vector<256x128xf32> -> vector<256x128xf32>
    %31 = arith.truncf %30 : vector<256x128xf32> to vector<256x128xbf16>
    %c0_18 = arith.constant 0 : index
    %c0_19 = arith.constant 0 : index
    %32 = vector.load %arg6[%c0_18, %c0_19] : memref<128x128xbf16, #tpu.memory_space<vmem>>, vector<128x128xbf16>
    %cst_20 = arith.constant dense<0.000000e+00> : vector<256x128xf32>
    %33 = tpu.matmul %31, %32, %cst_20 {dimension_numbers = #tpu.dot_dimension_numbers<[1], [0], [0], [1], [0, 0, 1, 1], [], []>} : vector<256x128xbf16>, vector<128x128xbf16>, vector<256x128xf32> -> vector<256x128xf32>
    %c0_21 = arith.constant 0 : index
    %c0_22 = arith.constant 0 : index
    %34 = vector.load %arg7[%c0_21, %c0_22] : memref<1x128xf32, #tpu.memory_space<vmem>>, vector<1x128xf32>
    %35 = vector.broadcast %34 : vector<1x128xf32> to vector<256x128xf32>
    %36 = arith.addf %33, %35 : vector<256x128xf32>
    %37 = arith.extf %1 : vector<256x128xbf16> to vector<256x128xf32>
    %cst_23 = arith.constant 0.707106769 : f32
    %38 = vector.broadcast %cst_23 : f32 to vector<256x128xf32>
    %39 = arith.mulf %37, %38 : vector<256x128xf32>
    %40 = arith.addf %36, %39 : vector<256x128xf32>
    %c0_24 = arith.constant 0 : index
    %c0_25 = arith.constant 0 : index
    %c0_26 = arith.constant 0 : index
    %41 = vector.load %arg8[%c0_24, %c0_25, %c0_26] : memref<1x256x128xf32, #tpu.memory_space<vmem>>, vector<1x256x128xf32>
    %42 = vector.shape_cast %41 : vector<1x256x128xf32> to vector<256x128xf32>
    %43 = vector.shape_cast %40 : vector<256x128xf32> to vector<1x256x128xf32>
    tpu.vector_store %arg8[%c0_24, %c0_25, %c0_26], %43 {strides = array<i32>} : memref<1x256x128xf32, #tpu.memory_space<vmem>>, vector<1x256x128xf32>,
    return
  }
  func.func @transform_0(%arg0: i32, %arg1: i32) -> (i32, i32, i32) {
    %c0_i32 = arith.constant 0 : i32
    %c0_i32_0 = arith.constant 0 : i32
    return %arg0, %arg1, %c0_i32 : i32, i32, i32
  }
  func.func @transform_1(%arg0: i32, %arg1: i32) -> (i32, i32, i32) {
    %c0_i32 = arith.constant 0 : i32
    %c0_i32_0 = arith.constant 0 : i32
    %c0_i32_1 = arith.constant 0 : i32
    return %arg0, %c0_i32, %c0_i32_0 : i32, i32, i32
  }
  func.func @transform_2(%arg0: i32, %arg1: i32) -> (i32, i32, i32) {
    %c0_i32 = arith.constant 0 : i32
    %c0_i32_0 = arith.constant 0 : i32
    %c0_i32_1 = arith.constant 0 : i32
    return %arg0, %c0_i32, %c0_i32_0 : i32, i32, i32
  }
  func.func @transform_3(%arg0: i32, %arg1: i32) -> (i32, i32, i32) {
    %c0_i32 = arith.constant 0 : i32
    %c0_i32_0 = arith.constant 0 : i32
    %c0_i32_1 = arith.constant 0 : i32
    return %arg0, %c0_i32, %c0_i32_0 : i32, i32, i32
  }
  func.func @transform_4(%arg0: i32, %arg1: i32) -> (i32, i32) {
    %c0_i32 = arith.constant 0 : i32
    %c0_i32_0 = arith.constant 0 : i32
    %c0_i32_1 = arith.constant 0 : i32
    return %c0_i32, %c0_i32_0 : i32, i32
  }
  func.func @transform_5(%arg0: i32, %arg1: i32) -> (i32, i32) {
    %c0_i32 = arith.constant 0 : i32
    %c0_i32_0 = arith.constant 0 : i32
    %c0_i32_1 = arith.constant 0 : i32
    return %c0_i32, %c0_i32_0 : i32, i32
  }
  func.func @transform_6(%arg0: i32, %arg1: i32) -> (i32, i32, i32) {
    %c0_i32 = arith.constant 0 : i32
    %c0_i32_0 = arith.constant 0 : i32
    return %arg0, %arg1, %c0_i32 : i32, i32, i32
  }
  func.func @transform_7(%arg0: i32, %arg1: i32) -> (i32, i32, i32) {
    %c0_i32 = arith.constant 0 : i32
    %c0_i32_0 = arith.constant 0 : i32
    return %arg0, %arg1, %c0_i32 : i32, i32, i32
  }
}

</mosaic_0001>

<bundles_post_ra>
// kernel: tpu_custom_call.1
= control target key start
LH: loop header
LB: loop body
LE: loop exit
PB: predicated region body
PF: predicated region fallthrough
CT: control target
= control target key end

     0   :  { %s4189_s0 = inlined_call_operand.hbm [shape: bf16[2,512,128], index: 0, kind: input, shape index: {}]   ;;  %s4190_s1 = inlined_call_operand.hbm [shape: bf16[2,128,128], index: 1, kind: input, shape index: {}]   ;;  %s4191_s2 = inlined_call_operand.hbm [shape: bf16[2,128,128], index: 2, kind: input, shape index: {}]   ;;  %s4192_s3 = inlined_call_operand.vmem [shape: f32[2,1,128], index: 3, kind: input, shape index: {}]   ;;  %s4193_s4 = inlined_call_operand.hbm [shape: bf16[128,128], index: 4, kind: input, shape index: {}]   ;;  %s4194_s5 = inlined_call_operand.vmem [shape: f32[1,128], index: 5, kind: input, shape index: {}]   ;;  %s4195_s6 = inlined_call_operand.hbm [shape: f32[2,512,128], index: 6, kind: output, shape index: {0}]   ;;  %s4196_s7 = inlined_call_operand.hbm [shape: bf16[2,512,128], index: 7, kind: output, shape index: {1}]  }
   0x1   :  { %4230 = sst [smem:[#allocation30_spill]] %s4190_s1 }
   0x2   :  { %4231 = sst [smem:[#allocation31_spill]] %s4192_s3 }
   0x3   :  { %4232 = sst [smem:[#allocation32_spill]] %s4193_s4 }
   0x4   :  { %4233 = sst [smem:[#allocation33_spill]] %s4194_s5 }
   0x5   :  { %4234 = sst [smem:[#allocation34_spill]] %s4195_s6 }
   0x6   :  { %4235 = sst [smem:[#allocation35_spill]] %s4196_s7 }
   0x7   :  { %13 = vsyncpa [#allocation3], 0 }
   0x8   :  { %15 = vsyncpa [#allocation3 + $0x1], 0 }
   0x9   :  { %16 = vsyncpa [#allocation6], 0 }
   0xa   :  { %18 = vsyncpa [#allocation6 + $0x1], 0 }
   0xb   :  { %19 = vsyncpa [#allocation9], 0 }
   0xc   :  { %20 = vsyncpa [#allocation4], 0 }
   0xd   :  { %22 = vsyncpa [#allocation4 + $0x1], 0 }
   0xe   :  { %23 = vsyncpa [#allocation12], 0 }
   0xf   :  { %25 = vsyncpa [#allocation12 + $0x1], 0  ;;  %s3304_s24 = smov 0   ;;  %s3306_s25 = smov 0  }
  0x10   :  { %s3308_s26 = smov 0   ;;  %s3310_s27 = smov 0  }
  0x11   :  { %s3312_s28 = smov 0   ;;  %s3314_s29 = smov 0  }
  0x12   :  { %s3316_s30 = smov 0   ;;  %s3318_s8 = smov 0  }
  0x13   :  { %s3320_s9 = smov 0   ;;  %s3322_s10 = smov 0  }
  0x14   :  { %s3324_s11 = smov 0  }
  0x15 LB: > { %4236 = sst [smem:[#allocation18_spill]] %s3214_s25  ;;  %p4208_p0 = scmp.eq.s32.totalorder %s3250_s11, 0  ;;  %s3250_s11 = sphi %s3324_s11, %s31_s11   ;;  %s3246_s10 = sphi %s3322_s10, %s4306_s10   ;;  %s3242_s9 = sphi %s3320_s9, %s4298_s9   ;;  %s3238_s8 = sphi %s3318_s8, %s4305_s8   ;;  %s3234_s30 = sphi %s3316_s30, %s4297_s30   ;;  %s3230_s29 = sphi %s3314_s29, %s4304_s29   ;;  %s3226_s28 = sphi %s3312_s28, %s4303_s28   ;;  %s3222_s27 = sphi %s3310_s27, %s4302_s27   ;;  %s3218_s26 = sphi %s3308_s26, %s4301_s26   ;;  %s3214_s25 = sphi %s3306_s25, %s4300_s25   ;;  %s3210_s24 = sphi %s3304_s24, %s4296_s24  }
  0x16   : > { %4237 = sst [smem:[#allocation19_spill]] %s3222_s27  ;;  %p85_p1 = scmp.ne.s32.totalorder %s3218_s26, %s3214_s25 }
  0x17   : > { %4238 = sst [smem:[#allocation20_spill]] %s3234_s30  ;;  %p4199_p3 = scmp.lt.s32.totalorder %s3250_s11, 4 }
  0x18   : > { %4239 = sst [smem:[#allocation21_spill]] %s3238_s8  ;;  %p87_p2 = por %p85_p1, %p4208_p0 }
  0x19   : > { %4240 = sst [smem:[#allocation22_spill]] %s3242_s9  ;;  %s304_s14 = sand.u32 1, %s3250_s11  }
  0x1a   : > { %s306_s15 = sand.u32 1, %s3218_s26   ;;  %s2275_s17 = sshll.u32 %s3246_s10, 10 }
  0x1b   : > { %s3369_s16 = sshll.u32 %s306_s15, 6  ;;  %s4241_s1 = sld [smem:[#allocation30_spill]] }
  0x1c   : > { %s308_s21 = scalar_lea.vmem [#allocation5], %s3369_s16  ;;  %p3380_p4 = pnand %p4199_p3, %p87_p2 }
  0x1d   : > { %s315_s22 = sshll.u32 %s308_s21, 4  ;;  %s3389_s18 = scalar_lea.hbm %s4191_s2, %s2275_s17  ;;  %s3384_s22 = int_to_ptr.vmem [resolvable:$true] %s315_s22 }
  0x1e   : > { %s4242_s23 = scalar_select %p3380_p4, 1, 0 }
  0x1f   : > { %s3391_s19 = scalar_lea.sflag [#allocation6], %s304_s14  ;;  %p4200_p6 = pneg %p3380_p4 }
  0x21   : > { %s3375_s20 = scalar_lea.hbm %s4241_s1, %s2275_s17  ;;  %s2975_s5 = scalar_lea.hbm %s4241_s1, 2048 }
  0x22   : > { %s2970_s12 = scalar_lea.hbm %s3375_s20, 1024  ;;  %p2976_p9 = scmp.lt.u32.totalorder %s3375_s20, %s4241_s1 }
  0x23   : > { %p2971_p5 = scmp.ne.s32.totalorder %s3375_s20, %s2970_s12  ;;  %p2977_p10 = scmp.lt.u32.totalorder %s2975_s5, %s2970_s12 }
  0x24   : > { %p2979_p12 = scmp.lt.u32.totalorder %s2970_s12, %s3375_s20 }
  0x25   : > { %p2973_p7 = pnand %p4200_p6, %p2971_p5  ;;  %p2978_p11 = por %p2977_p10, %p2976_p9 }
  0x27   : > { %p2974_p8 = pneg %p2973_p7  ;;  %p2980_p13 = por %p2979_p12, %p2978_p11 }
  0x29   : > { %p2981_p1 = pnand %p2980_p13, %p2974_p8 }
  0x2b   : > { %2984 = shalt.err (!%p2981_p1)
}
  0x2c   : > { %s2985_s13 = scalar_lea.vmem %s3384_s22, 1024  ;;  %s3252_s6 = smov [#allocation5]  }
  0x2d   : > { %p2986_p2 = scmp.ne.s32.totalorder %s3384_s22, %s2985_s13  ;;  %s2990_s14 = sshll.u32 %s3252_s6, 4  ;;  %s2991_s14 = int_to_ptr.vmem [resolvable:$false] %s2990_s14 }
  0x2e   : > { %s2992_s7 = scalar_lea.vmem %s2991_s14, 2048  ;;  %p2993_p3 = scmp.lt.s32.totalorder %s3384_s22, %s2991_s14 }
  0x2f   : > { %p2988_p5 = pnand %p2986_p2, %p4200_p6  ;;  %p2994_p9 = scmp.lt.s32.totalorder %s2992_s7, %s2985_s13 }
  0x31   : > { %p2989_p7 = pneg %p2988_p5  ;;  %p2995_p10 = por %p2994_p9, %p2993_p3 }
  0x33   : > { %p2996_p11 = pnand %p2995_p10, %p2989_p7 }
  0x35   : > { %2999 = shalt.err (!%p2996_p11)
}
  0x36   : > { %s4201_s5 = smov 64   ;;  %s4203_s30 = smov 4  }
  0x37   : > { %2660 = dma.hbm_to_vmem [thread:$0]  (!%p3380_p4), %s3375_s20, 1024, %s3384_s22, %s3391_s19, %s4201_s5, %s4201_s5, %s4203_s30  }
  0x38   : > { %s329_s12 = scalar_lea.vmem [#allocation7], %s3369_s16  ;;  %s3426_s15 = sadd.s32 4294967295, %s3250_s11  }
  0x39   : > { %s336_s17 = sshll.u32 %s329_s12, 4  ;;  %4243 = sst [smem:[#allocation23_spill]] %s3426_s15  ;;  %s3423_s17 = int_to_ptr.vmem [resolvable:$true] %s336_s17 }
  0x3a   : > { %s2170_s21 = sadd.s32 4294967294, %s3250_s11   ;;  %p65_p3 = scmp.ne.s32.totalorder %s3226_s28, %s3222_s27 }
  0x3b   : > { %p4206_p8 = scmp.eq.s32.totalorder %s3426_s15, 0  ;;  %p91_p12 = scmp.ne.s32.totalorder %s3214_s25, %s3210_s24 }
  0x3c   : > { %p217_p2 = scmp.eq.s32.totalorder %s2170_s21, 3  ;;  %p2171_p7 = scmp.ge.s32.totalorder %s3250_s11, 1 }
  0x3d   : > { %p3437_p1 = por %p4206_p8, %p65_p3  ;;  %p3443_p5 = por %p91_p12, %p4206_p8 }
  0x3e   : > { %p3448_p9 = por %p217_p2, %p65_p3  ;;  %p252_p10 = scmp.lt.s32.totalorder %s3250_s11, 5 }
  0x3f   : > { %s4244_s16 = scalar_select %p3437_p1, 1, 0 }
  0x40   : > { %s4246_s20 = scalar_select %p3443_p5, 1, 0 }
  0x41   : > { %4245 = sst [smem:[#allocation24_spill]] %s4244_s16  ;;  %p3453_p11 = pnand %p2171_p7, %p252_p10 }
  0x42   : > { %4247 = sst [smem:[#allocation25_spill]] %s4246_s20  ;;  %s3255_s13 = smov [#allocation8]  }
  0x43   : > { %s4248_s22 = scalar_select %p3448_p9, 1, 0 }
  0x44   : > { %s4250_s24 = scalar_select %p3453_p11, 1, 0 }
  0x45   : > { %4249 = sst [smem:[#allocation26_spill]] %s4248_s22  ;;  %s264_s6 = sshll.u32 %s3255_s13, 4  ;;  %s265_s6 = int_to_ptr.vmem [resolvable:$true] %s264_s6 }
  0x46   : > { %p2650_p6 = pneg %p3453_p11  ;;  %s40_s7 = sadd.s32 1, %s3242_s9 }
  0x47   : > { %p3466_p3 = scmp.ge.s32.totalorder %s40_s7, 2  ;;  %s4253_s4 = sld [smem:[#allocation32_spill]] }
  0x48   : > { %p3461_p12 = pnand %p2650_p6, %p4206_p8 }
  0x49   : > { %s4252_s12 = scalar_select %p3466_p3, 1, 0 }
  0x4a   : > { %p3002_p6 = pneg %p3461_p12 }
  0x4d   : > { %s3000_s13 = scalar_lea.hbm %s4253_s4, 1024 }
  0x4e   : > { %p3001_p7 = scmp.ne.s32.totalorder %s4253_s4, %s3000_s13  ;;  %p3007_p13 = scmp.lt.u32.totalorder %s3000_s13, %s4253_s4 }
  0x50   : > { %p3003_p10 = pnand %p3002_p6, %p3001_p7 }
  0x52   : > { %p3004_p8 = pneg %p3003_p10 }
  0x54   : > { %p3009_p0 = pnand %p3007_p13, %p3004_p8 }
  0x56   : > { %3012 = shalt.err (!%p3009_p0)
}
  0x57   : > { %s3013_s21 = scalar_lea.vmem %s265_s6, 1024  ;;  %p3021_p1 = scmp.lt.s32.totalorder %s265_s6, %s265_s6 }
  0x58   : > { %p3014_p2 = scmp.ne.s32.totalorder %s265_s6, %s3013_s21  ;;  %p3022_p11 = scmp.lt.s32.totalorder %s3013_s21, %s3013_s21 }
  0x5a   : > { %p3016_p9 = pnand %p3014_p2, %p3002_p6  ;;  %p3023_p4 = por %p3022_p11, %p3021_p1 }
  0x5c   : > { %p3017_p5 = pneg %p3016_p9 }
  0x5e   : > { %p3024_p3 = pnand %p3023_p4, %p3017_p5 }
  0x60   : > { %3027 = shalt.err (!%p3024_p3)
}
  0x61   : > { %s4254_s1 = smov 4   ;;  %s4255_s5 = smov 64  }
  0x62   : > { %2653 = dma.hbm_to_vmem [thread:$0]  (!%p3461_p12), %s4253_s4, 1024, %s265_s6, [#allocation9], %s4255_s5, %s4255_s5, %s4254_s1  }
  0x63   : > { %p4256_p0 = scmp.ne.s32.totalorder %s4252_s12, 0  ;;  %s4258_s3 = sadd.s32 1, %s3246_s10 }
  0x64   : > { %p4259_p4 = scmp.ne.s32.totalorder %s3230_s29, %s3226_s28  ;;  %p4260_p8 = scmp.eq.s32.totalorder %s3250_s11, 0 }
  0x65   : > { %s4308_s7 = smov (%p4256_p0, %s40_s7), 0  ;;  %s4310_s3 = smov (!%p4256_p0, %s4258_s3), %s3246_s10 }
  0x66   : > { %4257 = sst [smem:[#allocation27_spill]] %s4308_s7  ;;  %s48_s27 = ssub.s32 %s3242_s9, %s4308_s7 }
  0x67   : > { %p3508_p13 = por %p4260_p8, %p4259_p4  ;;  %p45_p1 = scmp.ge.s32.totalorder %s4310_s3, 2 }
  0x68   : > { %p4262_p5 = pmov %p4259_p4  ;;  %p4263_p9 = scmp.eq.s32.totalorder %s3426_s15, 3 }
  0x69   : > { %s4227_s21 = sand.u32 1, %s3230_s29   ;;  %s2175_s12 = sshll.u32 %s3242_s9, 5 }
  0x6a   : > { %p3517_p11 = por %p4263_p9, %p4262_p5  ;;  %s4312_s3 = smov (%p45_p1, %s4310_s3), 0 }
  0x6b   : > { %4266 = sst [smem:[#allocation29_spill]] %s4312_s3  ;;  %s2174_s13 = sshll.u32 %s4227_s21, 7 }
  0x6c   : > { %s4264_s6 = scalar_select %p3517_p11, 1, 0 }
  0x6d   : > { %s47_s30 = ssub.s32 %s3246_s10, %s4312_s3  ;;  %s2176_s4 = sshll.u32 %s3246_s10, 6 }
  0x6e   : > { %4265 = sst [smem:[#allocation28_spill]] %s4264_s6  ;;  %s49_s22 = sor.u32 %s48_s27, %s47_s30 }
  0x6f   : > { %p76_p12 = scmp.eq.s32.totalorder %s47_s30, 0  ;;  %p50_p3 = scmp.eq.s32.totalorder %s49_s22, 0 }
  0x70   : > { %s4267_s7 = sadd.s32 1, %s3218_s26  ;;  %s4268_s9 = sadd.s32 1, %s3230_s29 }
  0x71   : > { %s3533_s6 = scalar_select %p76_p12, %s3218_s26, %s4267_s7  }
  0x72   : > { %s3538_s8 = scalar_select %p50_p3, %s3230_s29, %s4268_s9  }
  0x73   : > { %s291_s20 = sadd.s32 %s2176_s4, %s2175_s12  ;;  %s285_s25 = scalar_lea.vmem [#allocation2], %s2174_s13 }
  0x74   : > { %s294_s15 = sshll.u32 %s285_s25, 4  ;;  %s2177_s16 = sshll.u32 %s291_s20, 6  ;;  %s3540_s15 = int_to_ptr.vmem [resolvable:$true] %s294_s15 }
  0x75   : > { %s3545_s27 = scalar_lea.hbm %s4189_s0, %s2177_s16  ;;  %p4269_p2 = scmp.lt.s32.totalorder %s3250_s11, 4 }
  0x76   : > { %s3028_s9 = scalar_lea.hbm %s3389_s18, 1024  ;;  %p4271_p10 = scmp.ne.s32.totalorder %s4242_s23, 0 }
  0x77   : > { %p3551_p7 = pnand %p4269_p2, %p3508_p13  ;;  %p3029_p6 = scmp.ne.s32.totalorder %s3389_s18, %s3028_s9 }
  0x78   : > { %p4272_p0 = pneg %p4271_p10  ;;  %s3033_s20 = scalar_lea.hbm %s4191_s2, 2048 }
  0x79   : > { %p3034_p1 = scmp.lt.u32.totalorder %s3389_s18, %s4191_s2  ;;  %p3035_p5 = scmp.lt.u32.totalorder %s3033_s20, %s3028_s9 }
  0x7a   : > { %p3031_p4 = pnand %p3029_p6, %p4272_p0  ;;  %p3037_p13 = scmp.lt.u32.totalorder %s3028_s9, %s3389_s18 }
  0x7b   : > { %p3036_p9 = por %p3035_p5, %p3034_p1 }
  0x7c   : > { %p3032_p8 = pneg %p3031_p4 }
  0x7d   : > { %p3038_p12 = por %p3037_p13, %p3036_p9 }
  0x7f   : > { %p3039_p3 = pnand %p3038_p12, %p3032_p8 }
  0x81   : > { %3042 = shalt.err (!%p3039_p3)
}
  0x82   : > { %s3043_s16 = scalar_lea.vmem %s3423_s17, 1024  ;;  %p4273_p6 = pmov %p4272_p0 }
  0x83   : > { %p3044_p2 = scmp.ne.s32.totalorder %s3423_s17, %s3043_s16  ;;  %s3256_s14 = smov [#allocation7]  }
  0x84   : > { %s3048_s21 = sshll.u32 %s3256_s14, 4  ;;  %s3049_s21 = int_to_ptr.vmem [resolvable:$false] %s3048_s21 }
  0x85   : > { %p3046_p0 = pnand %p3044_p2, %p4273_p6  ;;  %s3050_s13 = scalar_lea.vmem %s3049_s21, 2048 }
  0x86   : > { %p3051_p11 = scmp.lt.s32.totalorder %s3423_s17, %s3049_s21  ;;  %p3052_p1 = scmp.lt.s32.totalorder %s3050_s13, %s3043_s16 }
  0x87   : > { %p3047_p4 = pneg %p3046_p0 }
  0x88   : > { %p3053_p5 = por %p3052_p1, %p3051_p11 }
  0x8a   : > { %p3054_p9 = pnand %p3053_p5, %p3047_p4 }
  0x8c   : > { %3057 = shalt.err (!%p3054_p9)
}
  0x8d   : > { %2663 = dma.hbm_to_vmem [thread:$0]  (!%p4271_p10), %s3389_s18, 1024, %s3423_s17, %s3391_s19, %s4255_s5, %s4255_s5, %s4254_s1  }
  0x8e   : > { %s4274_s30 = sand.u32 1, %s3230_s29   ;;  %s3058_s9 = scalar_lea.hbm %s3545_s27, 2048 }
  0x8f   : > { %s3584_s22 = scalar_lea.sflag [#allocation3], %s4274_s30  ;;  %p3059_p11 = scmp.ne.s32.totalorder %s3545_s27, %s3058_s9 }
  0x90   : > { %p3060_p8 = pneg %p3551_p7  ;;  %s3063_s25 = scalar_lea.hbm %s4189_s0, 8192 }
  0x91   : > { %p3064_p3 = scmp.lt.u32.totalorder %s3545_s27, %s4189_s0  ;;  %p3065_p10 = scmp.lt.u32.totalorder %s3063_s25, %s3058_s9 }
  0x92   : > { %p3061_p13 = pnand %p3060_p8, %p3059_p11  ;;  %p3067_p6 = scmp.lt.u32.totalorder %s3058_s9, %s3545_s27 }
  0x93   : > { %p3066_p2 = por %p3065_p10, %p3064_p3 }
  0x94   : > { %p3062_p12 = pneg %p3061_p13 }
  0x95   : > { %p3068_p0 = por %p3067_p6, %p3066_p2 }
  0x97   : > { %p3069_p4 = pnand %p3068_p0, %p3062_p12 }
  0x99   : > { %3072 = shalt.err (!%p3069_p4)
}
  0x9a   : > { %s3073_s18 = scalar_lea.vmem %s3540_s15, 2048  ;;  %s3257_s19 = smov [#allocation2]  }
  0x9b   : > { %p3074_p1 = scmp.ne.s32.totalorder %s3540_s15, %s3073_s18  ;;  %s3078_s17 = sshll.u32 %s3257_s19, 4  ;;  %s3079_s17 = int_to_ptr.vmem [resolvable:$false] %s3078_s17 }
  0x9c   : > { %s3080_s3 = scalar_lea.vmem %s3079_s17, 4096  ;;  %p3081_p11 = scmp.lt.s32.totalorder %s3540_s15, %s3079_s17 }
  0x9d   : > { %p3076_p5 = pnand %p3074_p1, %p3060_p8  ;;  %p3082_p13 = scmp.lt.s32.totalorder %s3080_s3, %s3073_s18 }
  0x9f   : > { %p3077_p9 = pneg %p3076_p5  ;;  %p3083_p3 = por %p3082_p13, %p3081_p11 }
  0xa1   : > { %p3084_p10 = pnand %p3083_p3, %p3077_p9 }
  0xa3   : > { %3087 = shalt.err (!%p3084_p10)
}
  0xa4   : > { %2657 = dma.hbm_to_vmem [thread:$0]  (!%p3551_p7), %s3545_s27, 2048, %s3540_s15, %s3584_s22, %s4255_s5, %s4255_s5, %s4254_s1  }
  0xa5   : > { %p4275_p8 = scmp.ne.s32.totalorder %s4250_s24, 0 }
  0xa6   : > { %s4276_s16 = sld [smem:[#allocation24_spill]] (!%p4275_p8)  ;;  %s3618_s14 = sand.u32 (!%p4275_p8), 1, %s3226_s28  }
  0xa7   : > { %354 = sbr.rel (%p4275_p8) target bundleno = 1273 (0x4f9), region = 44  ;;  %s2185_s21 = sshll.u32 (!%p4275_p8), %s3618_s14, 7 }
  0xa8   : > { %s357_s13 = scalar_lea.sflag (!%p4275_p8), [#allocation3], %s3618_s14  ;;  %s3624_s7 = scalar_lea.vmem (!%p4275_p8), [#allocation2], %s2185_s21 }
  0xac   : > { %p4277_p12 = scmp.ne.s32.totalorder (!%p4275_p8), %s4276_s16, 0 }
  0xae   : > { %3189 = dma.done.wait (%p4277_p12), %s357_s13, 2048  }
  0xaf   : > { %3191 = vsyncadd (%p4277_p12), %s357_s13, 4294965248  ;;  %s4278_s15 = sld [smem:[#allocation23_spill]]  ;;  %s4279_s24 = sld [smem:[#allocation18_spill]] }
  0xb0   : > { %s4280_s1 = sld [smem:[#allocation25_spill]] }
  0xb5   : > { %s365_s5 = sand.u32 1, %s4278_s15   ;;  %s367_s27 = sand.u32 1, %s4279_s24  }
  0xb6   : > { %s2186_s30 = sshll.u32 %s367_s27, 6  ;;  %s366_s22 = scalar_lea.sflag [#allocation6], %s365_s5 }
  0xb7   : > { %s3632_s9 = scalar_lea.vmem [#allocation5], %s2186_s30  ;;  %p4281_p7 = scmp.ne.s32.totalorder %s4280_s1, 0 }
  0xb9   : > { %3193 = dma.done.wait (%p4281_p7), %s366_s22, 2048  }
  0xba   : > { %3195 = vsyncadd (%p4281_p7), %s366_s22, 4294965248  ;;  %s3638_s23 = scalar_lea.vmem [#allocation7], %s2186_s30  ;;  %p4282_p2 = scmp.eq.s32.totalorder %s4278_s15, 0 }
  0xbc   : > { %3197 = dma.done.wait (%p4282_p2), [#allocation9], 1024   ;;  %p4283_p6 = pmov %p4282_p2 }
  0xbd   : > { %v2770_v0 = vld [vmem:[%s3632_s9] sm:$0xff]   ;;  %v2771_v1 = vld [vmem:[%s3632_s9 + $0x8] sm:$0xff]   ;;  %v2772_v2 = vld [vmem:[%s3632_s9 + $0x10] sm:$0xff]   ;;  %s4284_s4 = sld [smem:[#allocation21_spill]]  ;;  %s4285_s18 = sld [smem:[#allocation31_spill]] }
  0xbe   : > { %3199 = vsyncadd (%p4283_p6), [#allocation9], 4294966272  ;;  %2476 = vmatprep.subr.bf16.mxu0 %v2770_v0  ;;  %2620 = vmatprep.subr.bf16.mxu1 %v2770_v0  ;;  %v2773_v3 = vld [vmem:[%s3632_s9 + $0x18] sm:$0xff]   ;;  %v438_v4 = vld [vmem:[%s3624_s7] sm:$0xff]   ;;  %s3948_s17 = scalar_lea.vmem [#allocation11], %s2185_s21  ;;  %s4286_s3 = sld [smem:[#allocation20_spill]] }
  0xbf   : > { %2477 = vmatpush3.bf16.msra.mxu0 %v2770_v0  ;;  %2628 = vmatpush3.bf16.msra.mxu1 %v2770_v0  ;;  %v454_v5 = vld [vmem:[%s3624_s7 + $0x40] sm:$0xff]   ;;  %v2775_v7 = vld [vmem:[%s3632_s9 + $0x28] sm:$0xff]   ;;  %v2776_v8 = vld [vmem:[%s3632_s9 + $0x30] sm:$0xff]   ;;  %s4287_s16 = sld [smem:[#allocation28_spill]]  ;;  %s1982_s1 = sshll.u32 %s3948_s17, 4  ;;  %s4005_s1 = int_to_ptr.vmem [resolvable:$true] %s1982_s1 }
  0xc0   : > { %2478 = vmatprep.subr.bf16.mxu0 %v2771_v1  ;;  %2621 = vmatprep.subr.bf16.mxu1 %v2771_v1  ;;  %v2774_v6 = vld [vmem:[%s3632_s9 + $0x20] sm:$0xff]   ;;  %v2777_v9 = vld [vmem:[%s3632_s9 + $0x38] sm:$0xff]   ;;  %v440_v10 = vld [vmem:[%s3624_s7 + $0x8] sm:$0xff]   ;;  %s4288_s30 = sld [smem:[#allocation35_spill]] }
  0xc1   : > { %2492 = vmatprep.mubr.bf16.mxu0 %v438_v4  ;;  %2508 = vmatprep.mubr.bf16.mxu1 %v454_v5  ;;  %v442_v11 = vld [vmem:[%s3624_s7 + $0x10] sm:$0xff]   ;;  %v456_v12 = vld [vmem:[%s3624_s7 + $0x48] sm:$0xff]   ;;  %v444_v14 = vld [vmem:[%s3624_s7 + $0x18] sm:$0xff]  }
  0xc2   : > { %v458_v13 = vld [vmem:[%s3624_s7 + $0x50] sm:$0xff]   ;;  %v446_v15 = vld [vmem:[%s3624_s7 + $0x20] sm:$0xff]   ;;  %v460_v16 = vld [vmem:[%s3624_s7 + $0x58] sm:$0xff]  }
  0xc3   : > { %2479 = vmatpush3.bf16.msra.mxu0 %v2771_v1  ;;  %2629 = vmatpush3.bf16.msra.mxu1 %v2771_v1  ;;  %v462_v17 = vld [vmem:[%s3624_s7 + $0x60] sm:$0xff]   ;;  %v448_v18 = vld [vmem:[%s3624_s7 + $0x28] sm:$0xff]   ;;  %v450_v19 = vld [vmem:[%s3624_s7 + $0x30] sm:$0xff]   ;;  %p432_p0 = scmp.lt.s32.totalorder %s4284_s4, 1  ;;  %s2268_s13 = sshll.u32 %s4284_s4, 6 }
  0xc4   : > { %2480 = vmatprep.subr.bf16.mxu0 %v2772_v2  ;;  %2622 = vmatprep.subr.bf16.mxu1 %v2772_v2  ;;  %v464_v20 = vld [vmem:[%s3624_s7 + $0x68] sm:$0xff]   ;;  %v466_v21 = vld [vmem:[%s3624_s7 + $0x70] sm:$0xff]   ;;  %v452_v22 = vld [vmem:[%s3624_s7 + $0x38] sm:$0xff]   ;;  %s2267_s21 = sshll.u32 %s4286_s3, 5 }
  0xc5   : > { %v468_v23 = vld [vmem:[%s3624_s7 + $0x78] sm:$0xff]   ;;  %s433_s25 = scalar_select %p432_p0, %s4284_s4, 1 }
  0xc6   : > { %s3996_s15 = sadd.s32 %s2268_s13, %s2267_s21  ;;  %s4289_s22 = smov %s4288_s30 }
  0xc7   : > { %2481 = vmatpush3.bf16.msra.mxu0 %v2772_v2  ;;  %2630 = vmatpush3.bf16.msra.mxu1 %v2772_v2  ;;  %s434_s19 = scalar_lea.vmem %s4285_s18, %s433_s25  ;;  %s2272_s24 = sshll.u32 %s3996_s15, 6 }
  0xc8   : > { %2482 = vmatprep.subr.bf16.mxu0 %v2773_v3  ;;  %2623 = vmatprep.subr.bf16.mxu1 %v2773_v3  ;;  %v3673_v24 = vld [vmem:[%s434_s19] ss:$0 sm:$0xff]  ;;  %s4003_s9 = scalar_lea.hbm %s4288_s30, %s2272_s24  ;;  %s3088_s25 = scalar_lea.vmem %s4005_s1, 2048 }
  0xc9   : > { %p3089_p4 = scmp.ne.s32.totalorder %s4005_s1, %s3088_s25  ;;  %p4290_p1 = scmp.ne.s32.totalorder %s4287_s16, 0 }
  0xca   : > { %s3258_s4 = smov [#allocation11]  }
  0xcb   : > { %2483 = vmatpush3.bf16.msra.mxu0 %v2773_v3  ;;  %2631 = vmatpush3.bf16.msra.mxu1 %v2773_v3  ;;  %p3090_p5 = pnand %p3089_p4, %p4290_p1  ;;  %s3092_s20 = sshll.u32 %s3258_s4, 4  ;;  %s3093_s20 = int_to_ptr.vmem [resolvable:$false] %s3092_s20 }
  0xcc   : > { %2484 = vmatprep.subr.bf16.mxu0 %v2774_v6  ;;  %2624 = vmatprep.subr.bf16.mxu1 %v2774_v6  ;;  %s3094_s12 = scalar_lea.vmem %s3093_s20, 4096  ;;  %p3095_p11 = scmp.lt.s32.totalorder %s4005_s1, %s3093_s20 }
  0xcd   : > { %p3091_p9 = pneg %p3090_p5  ;;  %p3096_p13 = scmp.lt.s32.totalorder %s3094_s12, %s3088_s25 }
  0xcf   : > { %2485 = vmatpush3.bf16.msra.mxu0 %v2774_v6  ;;  %2632 = vmatpush3.bf16.msra.mxu1 %v2774_v6  ;;  %p3097_p3 = por %p3096_p13, %p3095_p11 }
  0xd0   : > { %2486 = vmatprep.subr.bf16.mxu0 %v2775_v7  ;;  %2625 = vmatprep.subr.bf16.mxu1 %v2775_v7 }
  0xd1   : > { %p3098_p10 = pnand %p3097_p3, %p3091_p9 }
  0xd3   : > { %2487 = vmatpush3.bf16.msra.mxu0 %v2775_v7  ;;  %2633 = vmatpush3.bf16.msra.mxu1 %v2775_v7 }
  0xd4   : > { %2488 = vmatprep.subr.bf16.mxu0 %v2776_v8  ;;  %2626 = vmatprep.subr.bf16.mxu1 %v2776_v8 }
  0xd7   : > { %2489 = vmatpush3.bf16.msra.mxu0 %v2776_v8  ;;  %2634 = vmatpush3.bf16.msra.mxu1 %v2776_v8 }
  0xd8   : > { %2490 = vmatprep.subr.bf16.mxu0 %v2777_v9  ;;  %2627 = vmatprep.subr.bf16.mxu1 %v2777_v9 }
  0xdb   : > { %2491 = vmatpush3.bf16.msra.mxu0 %v2777_v9  ;;  %2635 = vmatpush3.bf16.msra.mxu1 %v2777_v9 }
  0xde   : > { %2493 = vmatmul.mubr.bf16.vlgmr.msra.gmra.mrb[0].mxu0 %v440_v10  ;;  %2509 = vmatmul.mubr.bf16.vlgmr.msra.gmra.mrb[0].mxu1 %v456_v12 }
  0xdf   : > { %2496 = vmatprep.mubr.bf16.mxu0 %v442_v11  ;;  %2512 = vmatprep.mubr.bf16.mxu1 %v458_v13 }
  0xe6   : > { %2497 = vmatmul.mubr.bf16.gmra.mrb[4].mxu0 %v444_v14  ;;  %2513 = vmatmul.mubr.bf16.gmra.mrb[4].mxu1 %v460_v16 }
  0xe7   : > { %2500 = vmatprep.mubr.bf16.mxu0 %v446_v15  ;;  %2516 = vmatprep.mubr.bf16.mxu1 %v462_v17 }
  0xee   : > { %2501 = vmatmul.mubr.bf16.gmra.mrb[8].mxu0 %v448_v18  ;;  %2517 = vmatmul.mubr.bf16.gmra.mrb[8].mxu1 %v464_v20 }
  0xef   : > { %2504 = vmatprep.mubr.bf16.mxu0 %v450_v19  ;;  %2520 = vmatprep.mubr.bf16.mxu1 %v466_v21 }
  0xf6   : > { %2505 = vmatmul.mubr.bf16.gmra.mrb[12].mxu0 %v452_v22  ;;  %2521 = vmatmul.mubr.bf16.gmra.mrb[12].mxu1 %v468_v23 }
 0x1b1   : > { %v2494_v25 = vpop.f32.mrb[0].mxu0  ;;  %v3678_v28 = vpop.f32.mrb[0].mxu1 }
 0x1b2   : > { %v3676_v26 = vadd.f32 %v2494_v25, %v3673_v24  ;;  %v671_v27 = vpop.f32.mrb[1].mxu0  ;;  %v735_v31 = vpop.f32.mrb[1].mxu1  ;;  %v3750_v11 = vadd.f32 %v3678_v28, %v3673_v24 }
 0x1b3   : > { %v3681_v29 = vadd.f32 %v3673_v24, %v671_v27  ;;  %v2495_v30 = vpop.f32.mrb[2].mxu0  ;;  %v2511_v33 = vpop.f32.mrb[2].mxu1  ;;  %v3740_v9 = vadd.f32 %v3673_v24, %v735_v31  ;;  %v2794_v27 = vld [vmem:[%s3638_s23] sm:$0xff]  }
 0x1b4   : > { %802 = vmax.xlane.f32.xlu1 %v3676_v26  ;;  %v674_v32 = vpop.f32.mrb[3].mxu0  ;;  %v738_v34 = vpop.f32.mrb[3].mxu1  ;;  %v3686_v35 = vadd.f32 %v2495_v30, %v3673_v24  ;;  %v3754_v12 = vadd.f32 %v2511_v33, %v3673_v24  ;;  %2524 = vmatprep.subr.bf16.mxu1 %v2794_v27 }
 0x1b5   : > { %798 = vmax.xlane.f32.xlu0 %v3681_v29  ;;  %v3689_v36 = vadd.f32 %v3673_v24, %v674_v32  ;;  %v3744_v10 = vadd.f32 %v3673_v24, %v738_v34  ;;  %2525 = vmatpush3.bf16.msra.mxu1 %v2794_v27 }
 0x1b8   : > { %804 = vmax.xlane.f32.xlu1 %v3686_v35 }
 0x1b9   : > { %v2498_v37 = vpop.f32.mrb[4].mxu0  ;;  %800 = vmax.xlane.f32.xlu0 %v3689_v36  ;;  %v2514_v39 = vpop.f32.mrb[4].mxu1 }
 0x1ba   : > { %v687_v38 = vpop.f32.mrb[5].mxu0  ;;  %v751_v42 = vpop.f32.mrb[5].mxu1  ;;  %v3701_v47 = vadd.f32 %v2498_v37, %v3673_v24  ;;  %v3766_v15 = vadd.f32 %v2514_v39, %v3673_v24 }
 0x1bb   : > { %v3694_v40 = vadd.f32 %v3673_v24, %v687_v38  ;;  %v2499_v41 = vpop.f32.mrb[6].mxu0  ;;  %v2515_v44 = vpop.f32.mrb[6].mxu1  ;;  %v3757_v13 = vadd.f32 %v3673_v24, %v751_v42 }
 0x1bc   : > { %v690_v43 = vpop.f32.mrb[7].mxu0  ;;  %v754_v46 = vpop.f32.mrb[7].mxu1  ;;  %v3705_v48 = vadd.f32 %v2499_v41, %v3673_v24  ;;  %v3770_v16 = vadd.f32 %v2515_v44, %v3673_v24 }
 0x1bd   : > { %v3697_v45 = vadd.f32 %v3673_v24, %v690_v43  ;;  %806 = vmax.xlane.f32.xlu0 %v3694_v40  ;;  %v3761_v14 = vadd.f32 %v3673_v24, %v754_v46 }
 0x1bf   : > { %808 = vmax.xlane.f32.xlu1 %v3697_v45 }
 0x1c1   : > { %v2502_v49 = vpop.f32.mrb[8].mxu0  ;;  %810 = vmax.xlane.f32.xlu0 %v3701_v47  ;;  %v2518_v51 = vpop.f32.mrb[8].mxu1 }
 0x1c2   : > { %v703_v50 = vpop.f32.mrb[9].mxu0  ;;  %v767_v54 = vpop.f32.mrb[9].mxu1  ;;  %v3717_v59 = vadd.f32 %v2502_v49, %v3673_v24  ;;  %v3782_v19 = vadd.f32 %v2518_v51, %v3673_v24 }
 0x1c3   : > { %v3709_v52 = vadd.f32 %v3673_v24, %v703_v50  ;;  %v2503_v53 = vpop.f32.mrb[10].mxu0  ;;  %812 = vmax.xlane.f32.xlu1 %v3705_v48  ;;  %v2519_v56 = vpop.f32.mrb[10].mxu1  ;;  %v3773_v17 = vadd.f32 %v3673_v24, %v767_v54 }
 0x1c4   : > { %v706_v55 = vpop.f32.mrb[11].mxu0  ;;  %v770_v58 = vpop.f32.mrb[11].mxu1  ;;  %v3721_v60 = vadd.f32 %v2503_v53, %v3673_v24  ;;  %v3786_v20 = vadd.f32 %v2519_v56, %v3673_v24 }
 0x1c5   : > { %v3713_v57 = vadd.f32 %v3673_v24, %v706_v55  ;;  %814 = vmax.xlane.f32.xlu0 %v3709_v52  ;;  %v3777_v18 = vadd.f32 %v3673_v24, %v770_v58 }
 0x1c7   : > { %816 = vmax.xlane.f32.xlu1 %v3713_v57 }
 0x1c9   : > { %v2506_v61 = vpop.f32.mrb[12].mxu0  ;;  %818 = vmax.xlane.f32.xlu0 %v3717_v59  ;;  %v2522_v63 = vpop.f32.mrb[12].mxu1 }
 0x1ca   : > { %v719_v62 = vpop.f32.mrb[13].mxu0  ;;  %v783_v2 = vpop.f32.mrb[13].mxu1  ;;  %v3733_v7 = vadd.f32 %v2506_v61, %v3673_v24  ;;  %v3798_v23 = vadd.f32 %v2522_v63, %v3673_v24 }
 0x1cb   : > { %v3725_v0 = vadd.f32 %v3673_v24, %v719_v62  ;;  %v2507_v1 = vpop.f32.mrb[14].mxu0  ;;  %820 = vmax.xlane.f32.xlu1 %v3721_v60  ;;  %v2523_v4 = vpop.f32.mrb[14].mxu1  ;;  %v3789_v21 = vadd.f32 %v3673_v24, %v783_v2 }
 0x1cc   : > { %v722_v3 = vpop.f32.mrb[15].mxu0  ;;  %v786_v6 = vpop.f32.mrb[15].mxu1  ;;  %v3737_v8 = vadd.f32 %v2507_v1, %v3673_v24  ;;  %v3802_v25 = vadd.f32 %v2523_v4, %v3673_v24 }
 0x1cd   : > { %v3729_v5 = vadd.f32 %v3673_v24, %v722_v3  ;;  %822 = vmax.xlane.f32.xlu0 %v3725_v0  ;;  %v3793_v22 = vadd.f32 %v3673_v24, %v786_v6 }
 0x1cf   : > { %824 = vmax.xlane.f32.xlu1 %v3729_v5 }
 0x1d1   : > { %826 = vmax.xlane.f32.xlu0 %v3733_v7 }
 0x1d3   : > { %828 = vmax.xlane.f32.xlu1 %v3737_v8 }
 0x1d5   : > { %830 = vmax.xlane.f32.xlu0 %v3740_v9 }
 0x1d7   : > { %832 = vmax.xlane.f32.xlu1 %v3744_v10 }
 0x1d9   : > { %834 = vmax.xlane.f32.xlu0 %v3750_v11 }
 0x1db   : > { %836 = vmax.xlane.f32.xlu1 %v3754_v12 }
 0x1dd   : > { %838 = vmax.xlane.f32.xlu0 %v3757_v13 }
 0x1df   : > { %840 = vmax.xlane.f32.xlu1 %v3761_v14 }
 0x1e1   : > { %842 = vmax.xlane.f32.xlu0 %v3766_v15 }
 0x1e3   : > { %844 = vmax.xlane.f32.xlu1 %v3770_v16 }
 0x1e5   : > { %846 = vmax.xlane.f32.xlu0 %v3773_v17 }
 0x1e7   : > { %848 = vmax.xlane.f32.xlu1 %v3777_v18 }
 0x1e9   : > { %850 = vmax.xlane.f32.xlu0 %v3782_v19 }
 0x1eb   : > { %852 = vmax.xlane.f32.xlu1 %v3786_v20 }
 0x1ed   : > { %854 = vmax.xlane.f32.xlu0 %v3789_v21 }
 0x1ef   : > { %856 = vmax.xlane.f32.xlu1 %v3793_v22 }
 0x1f1   : > { %858 = vmax.xlane.f32.xlu0 %v3798_v23 }
 0x1f3   : > { %860 = vmax.xlane.f32.xlu1 %v3802_v25 }
 0x241   : > { %v803_v28 = vpop.xlane.xlu1 %802 }
 0x242   : > { %v864_v30 = vsub.f32 %v3676_v26, %v803_v28  ;;  %v799_v31 = vpop.xlane.xlu0 %798 }
 0x243   : > { %v862_v32 = vsub.f32 %v3681_v29, %v799_v31 }
 0x244   : > { %v898_v37 = vmul.f32 1.442695, %v864_v30 }
 0x245   : > { %v894_v33 = vmul.f32 1.442695, %v862_v32  ;;  %v805_v34 = vpop.xlane.xlu1 %804 }
 0x246   : > { %v865_v38 = vsub.f32 %v3686_v35, %v805_v34  ;;  %v801_v24 = vpop.xlane.xlu0 %800 }
 0x247   : > { %2826 = vpow2.f32 %v894_v33  ;;  %v863_v39 = vsub.f32 %v3689_v36, %v801_v24 }
 0x248   : > { %2828 = vpow2.f32 %v898_v37  ;;  %v900_v42 = vmul.f32 1.442695, %v865_v38  ;;  %v2795_v38 = vld [vmem:[%s3638_s23 + $0x8] sm:$0xff]  }
 0x249   : > { %v896_v41 = vmul.f32 1.442695, %v863_v39  ;;  %2526 = vmatprep.subr.bf16.mxu1 %v2795_v38 }
 0x24a   : > { %v807_v43 = vpop.xlane.xlu0 %806  ;;  %2527 = vmatpush3.bf16.msra.mxu1 %v2795_v38 }
 0x24b   : > { %2830 = vpow2.f32 %v896_v41  ;;  %v866_v44 = vsub.f32 %v3694_v40, %v807_v43 }
 0x24c   : > { %v809_v26 = vpop.xlane.xlu1 %808  ;;  %2832 = vpow2.f32 %v900_v42 }
 0x24d   : > { %v902_v46 = vmul.f32 1.442695, %v866_v44  ;;  %v867_v29 = vsub.f32 %v3697_v45, %v809_v26 }
 0x24e   : > { %v811_v49 = vpop.xlane.xlu0 %810 }
 0x24f   : > { %2834 = vpow2.f32 %v902_v46  ;;  %v904_v50 = vmul.f32 1.442695, %v867_v29  ;;  %v868_v35 = vsub.f32 %v3701_v47, %v811_v49  ;;  %v2796_v46 = vld [vmem:[%s3638_s23 + $0x10] sm:$0xff]  }
 0x250   : > { %v813_v51 = vpop.xlane.xlu1 %812  ;;  %2528 = vmatprep.subr.bf16.mxu1 %v2796_v46 }
 0x251   : > { %v3814_v53 = vpop.eup %2826  ;;  %v906_v36 = vmul.f32 1.442695, %v868_v35  ;;  %v869_v54 = vsub.f32 %v3705_v48, %v813_v51  ;;  %2836 = vpow2.f32 %v904_v50  ;;  %2529 = vmatpush3.bf16.msra.mxu1 %v2796_v46 }
 0x252   : > { %958 = vadd.xlane.f32.xlu0 %v3814_v53  ;;  %v815_v40 = vpop.xlane.xlu0 %814  ;;  %v3819_v56 = vpop.eup %2828 }
 0x253   : > { %2838 = vpow2.f32 %v906_v36  ;;  %v908_v55 = vmul.f32 1.442695, %v869_v54  ;;  %v870_v45 = vsub.f32 %v3709_v52, %v815_v40  ;;  %v2797_v54 = vld [vmem:[%s3638_s23 + $0x18] sm:$0xff]  }
 0x254   : > { %v817_v58 = vpop.xlane.xlu1 %816  ;;  %2530 = vmatprep.subr.bf16.mxu1 %v2797_v54 }
 0x255   : > { %v3821_v61 = vpop.eup %2830  ;;  %v910_v47 = vmul.f32 1.442695, %v870_v45  ;;  %v871_v62 = vsub.f32 %v3713_v57, %v817_v58  ;;  %2840 = vpow2.f32 %v908_v55  ;;  %2531 = vmatpush3.bf16.msra.mxu1 %v2797_v54 }
 0x256   : > { %962 = vadd.xlane.f32.xlu0 %v3819_v56  ;;  %960 = vadd.xlane.f32.xlu1 %v3821_v61  ;;  %v819_v48 = vpop.xlane.xlu0 %818  ;;  %v3827_v2 = vpop.eup %2832 }
 0x257   : > { %2842 = vpow2.f32 %v910_v47  ;;  %v912_v63 = vmul.f32 1.442695, %v871_v62  ;;  %v872_v1 = vsub.f32 %v3717_v59, %v819_v48  ;;  %v2798_v48 = vld [vmem:[%s3638_s23 + $0x20] sm:$0xff]  }
 0x258   : > { %v821_v52 = vpop.xlane.xlu1 %820  ;;  %2532 = vmatprep.subr.bf16.mxu1 %v2798_v48 }
 0x259   : > { %v3829_v3 = vpop.eup %2834  ;;  %v914_v4 = vmul.f32 1.442695, %v872_v1  ;;  %v873_v6 = vsub.f32 %v3721_v60, %v821_v52  ;;  %2844 = vpow2.f32 %v912_v63  ;;  %2533 = vmatpush3.bf16.msra.mxu1 %v2798_v48 }
 0x25a   : > { %964 = vadd.xlane.f32.xlu1 %v3827_v2  ;;  %966 = vadd.xlane.f32.xlu0 %v3829_v3  ;;  %v823_v57 = vpop.xlane.xlu0 %822 }
 0x25b   : > { %2846 = vpow2.f32 %v914_v4  ;;  %v916_v27 = vmul.f32 1.442695, %v873_v6  ;;  %v874_v28 = vsub.f32 %v3725_v0, %v823_v57  ;;  %v3835_v59 = vpop.eup %2836 }
 0x25c   : > { %v825_v30 = vpop.xlane.xlu1 %824 }
 0x25d   : > { %v3837_v31 = vpop.eup %2838  ;;  %v918_v32 = vmul.f32 1.442695, %v874_v28  ;;  %v875_v33 = vsub.f32 %v3729_v5, %v825_v30  ;;  %2848 = vpow2.f32 %v916_v27  ;;  %v2799_v27 = vld [vmem:[%s3638_s23 + $0x28] sm:$0xff]  }
 0x25e   : > { %968 = vadd.xlane.f32.xlu1 %v3835_v59  ;;  %970 = vadd.xlane.f32.xlu0 %v3837_v31  ;;  %v827_v60 = vpop.xlane.xlu0 %826 }
 0x25f   : > { %2850 = vpow2.f32 %v918_v32  ;;  %v920_v34 = vmul.f32 1.442695, %v875_v33  ;;  %v876_v37 = vsub.f32 %v3733_v7, %v827_v60  ;;  %v3844_v0 = vpop.eup %2840  ;;  %2534 = vmatprep.subr.bf16.mxu1 %v2799_v27 }
 0x260   : > { %v829_v24 = vpop.xlane.xlu1 %828  ;;  %2535 = vmatpush3.bf16.msra.mxu1 %v2799_v27  ;;  %v2804_v27 = vld [vmem:[#allocation8 + $0x10] sm:$0xff]  }
 0x261   : > { %v3846_v39 = vpop.eup %2842  ;;  %v922_v41 = vmul.f32 1.442695, %v876_v37  ;;  %v877_v5 = vsub.f32 %v3737_v8, %v829_v24  ;;  %2852 = vpow2.f32 %v920_v34  ;;  %v2800_v37 = vld [vmem:[%s3638_s23 + $0x30] sm:$0xff]  }
 0x262   : > { %972 = vadd.xlane.f32.xlu1 %v3844_v0  ;;  %974 = vadd.xlane.f32.xlu0 %v3846_v39  ;;  %v831_v42 = vpop.xlane.xlu0 %830 }
 0x263   : > { %2854 = vpow2.f32 %v922_v41  ;;  %v924_v43 = vmul.f32 1.442695, %v877_v5  ;;  %v878_v7 = vsub.f32 %v3740_v9, %v831_v42  ;;  %v3852_v44 = vpop.eup %2844  ;;  %2536 = vmatprep.subr.bf16.mxu1 %v2800_v37 }
 0x264   : > { %v833_v26 = vpop.xlane.xlu1 %832  ;;  %2537 = vmatpush3.bf16.msra.mxu1 %v2800_v37 }
 0x265   : > { %v3855_v29 = vpop.eup %2846  ;;  %v926_v8 = vmul.f32 1.442695, %v878_v7  ;;  %v879_v49 = vsub.f32 %v3744_v10, %v833_v26  ;;  %2856 = vpow2.f32 %v924_v43  ;;  %v2801_v7 = vld [vmem:[%s3638_s23 + $0x38] sm:$0xff]   ;;  %s1949_s23 = scalar_lea.sflag [#allocation12], %s3618_s14 }
 0x266   : > { %976 = vadd.xlane.f32.xlu1 %v3852_v44  ;;  %978 = vadd.xlane.f32.xlu0 %v3855_v29  ;;  %v835_v50 = vpop.xlane.xlu0 %834 }
 0x267   : > { %2858 = vpow2.f32 %v926_v8  ;;  %v928_v35 = vmul.f32 1.442695, %v879_v49  ;;  %v880_v9 = vsub.f32 %v3750_v11, %v835_v50  ;;  %v3861_v51 = vpop.eup %2848  ;;  %2538 = vmatprep.subr.bf16.mxu1 %v2801_v7 }
 0x268   : > { %v837_v36 = vpop.xlane.xlu1 %836  ;;  %2539 = vmatpush3.bf16.msra.mxu1 %v2801_v7 }
 0x269   : > { %v3864_v40 = vpop.eup %2850  ;;  %v930_v10 = vmul.f32 1.442695, %v880_v9  ;;  %v881_v55 = vsub.f32 %v3754_v12, %v837_v36  ;;  %2860 = vpow2.f32 %v928_v35 }
 0x26a   : > { %980 = vadd.xlane.f32.xlu1 %v3861_v51  ;;  %982 = vadd.xlane.f32.xlu0 %v3864_v40  ;;  %v839_v45 = vpop.xlane.xlu0 %838 }
 0x26b   : > { %2862 = vpow2.f32 %v930_v10  ;;  %v932_v11 = vmul.f32 1.442695, %v881_v55  ;;  %v882_v58 = vsub.f32 %v3757_v13, %v839_v45  ;;  %v3870_v47 = vpop.eup %2852 }
 0x26c   : > { %v841_v62 = vpop.xlane.xlu1 %840 }
 0x26d   : > { %v3873_v63 = vpop.eup %2854  ;;  %v934_v12 = vmul.f32 1.442695, %v882_v58  ;;  %v883_v1 = vsub.f32 %v3761_v14, %v841_v62  ;;  %2864 = vpow2.f32 %v932_v11 }
 0x26e   : > { %984 = vadd.xlane.f32.xlu1 %v3870_v47  ;;  %986 = vadd.xlane.f32.xlu0 %v3873_v63  ;;  %v843_v52 = vpop.xlane.xlu0 %842 }
 0x26f   : > { %2866 = vpow2.f32 %v934_v12  ;;  %v936_v13 = vmul.f32 1.442695, %v883_v1  ;;  %v884_v4 = vsub.f32 %v3766_v15, %v843_v52  ;;  %v3879_v6 = vpop.eup %2856 }
 0x270   : > { %v845_v57 = vpop.xlane.xlu1 %844 }
 0x271   : > { %v3882_v28 = vpop.eup %2858  ;;  %v938_v14 = vmul.f32 1.442695, %v884_v4  ;;  %v885_v30 = vsub.f32 %v3770_v16, %v845_v57  ;;  %2868 = vpow2.f32 %v936_v13  ;;  %v2802_v4 = vld [vmem:[#allocation8] sm:$0xff]   ;;  %v2803_v57 = vld [vmem:[#allocation8 + $0x8] sm:$0xff]  }
 0x272   : > { %988 = vadd.xlane.f32.xlu1 %v3879_v6  ;;  %990 = vadd.xlane.f32.xlu0 %v3882_v28  ;;  %v847_v32 = vpop.xlane.xlu0 %846 }
 0x273   : > { %2870 = vpow2.f32 %v938_v14  ;;  %v940_v15 = vmul.f32 1.442695, %v885_v30  ;;  %v886_v33 = vsub.f32 %v3773_v17, %v847_v32  ;;  %v3888_v60 = vpop.eup %2860  ;;  %2572 = vmatprep.subr.bf16.mxu0 %v2802_v4  ;;  %v2805_v14 = vld [vmem:[#allocation8 + $0x18] sm:$0xff]   ;;  %v2806_v30 = vld [vmem:[#allocation8 + $0x20] sm:$0xff]   ;;  %v2807_v32 = vld [vmem:[#allocation8 + $0x28] sm:$0xff]  }
 0x274   : > { %v849_v34 = vpop.xlane.xlu1 %848  ;;  %2573 = vmatpush3.bf16.msra.mxu0 %v2802_v4 }
 0x275   : > { %v3891_v38 = vpop.eup %2862  ;;  %v942_v16 = vmul.f32 1.442695, %v886_v33  ;;  %v887_v24 = vsub.f32 %v3777_v18, %v849_v34  ;;  %2872 = vpow2.f32 %v940_v15  ;;  %2574 = vmatprep.subr.bf16.mxu0 %v2803_v57  ;;  %v2808_v15 = vld [vmem:[#allocation8 + $0x30] sm:$0xff]  }
 0x276   : > { %992 = vadd.xlane.f32.xlu1 %v3888_v60  ;;  %994 = vadd.xlane.f32.xlu0 %v3891_v38  ;;  %v851_v41 = vpop.xlane.xlu0 %850 }
 0x277   : > { %2874 = vpow2.f32 %v942_v16  ;;  %v944_v17 = vmul.f32 1.442695, %v887_v24  ;;  %v888_v5 = vsub.f32 %v3782_v19, %v851_v41  ;;  %v3897_v42 = vpop.eup %2864 }
 0x278   : > { %v853_v43 = vpop.xlane.xlu1 %852  ;;  %2575 = vmatpush3.bf16.msra.mxu0 %v2803_v57 }
 0x279   : > { %v3900_v26 = vpop.eup %2866  ;;  %v946_v46 = vmul.f32 1.442695, %v888_v5  ;;  %v889_v18 = vsub.f32 %v3786_v20, %v853_v43  ;;  %2876 = vpow2.f32 %v944_v17  ;;  %2576 = vmatprep.subr.bf16.mxu0 %v2804_v27 }
 0x27a   : > { %996 = vadd.xlane.f32.xlu1 %v3897_v42  ;;  %998 = vadd.xlane.f32.xlu0 %v3900_v26  ;;  %v855_v8 = vpop.xlane.xlu0 %854 }
 0x27b   : > { %2878 = vpow2.f32 %v946_v46  ;;  %v948_v49 = vmul.f32 1.442695, %v889_v18  ;;  %v890_v19 = vsub.f32 %v3789_v21, %v855_v8  ;;  %v3906_v50 = vpop.eup %2868 }
 0x27c   : > { %v857_v35 = vpop.xlane.xlu1 %856  ;;  %2577 = vmatpush3.bf16.msra.mxu0 %v2804_v27 }
 0x27d   : > { %v3908_v9 = vpop.eup %2870  ;;  %v950_v36 = vmul.f32 1.442695, %v890_v19  ;;  %v891_v20 = vsub.f32 %v3793_v22, %v857_v35  ;;  %2880 = vpow2.f32 %v948_v49  ;;  %2578 = vmatprep.subr.bf16.mxu0 %v2805_v14 }
 0x27e   : > { %1000 = vadd.xlane.f32.xlu1 %v3906_v50  ;;  %1002 = vadd.xlane.f32.xlu0 %v3908_v9  ;;  %v859_v54 = vpop.xlane.xlu0 %858 }
 0x27f   : > { %2882 = vpow2.f32 %v950_v36  ;;  %v952_v10 = vmul.f32 1.442695, %v891_v20  ;;  %v892_v21 = vsub.f32 %v3798_v23, %v859_v54  ;;  %v3914_v55 = vpop.eup %2872 }
 0x280   : > { %v861_v45 = vpop.xlane.xlu1 %860  ;;  %2579 = vmatpush3.bf16.msra.mxu0 %v2805_v14 }
 0x281   : > { %v3916_v11 = vpop.eup %2874  ;;  %v954_v58 = vmul.f32 1.442695, %v892_v21  ;;  %v893_v62 = vsub.f32 %v3802_v25, %v861_v45  ;;  %2884 = vpow2.f32 %v952_v10  ;;  %2580 = vmatprep.subr.bf16.mxu0 %v2806_v30 }
 0x282   : > { %1004 = vadd.xlane.f32.xlu1 %v3914_v55  ;;  %1006 = vadd.xlane.f32.xlu0 %v3916_v11 }
 0x283   : > { %2886 = vpow2.f32 %v954_v58  ;;  %v956_v22 = vmul.f32 1.442695, %v893_v62  ;;  %v3921_v48 = vpop.eup %2876 }
 0x284   : > { %2581 = vmatpush3.bf16.msra.mxu0 %v2806_v30 }
 0x285   : > { %v3923_v12 = vpop.eup %2878  ;;  %2888 = vpow2.f32 %v956_v22  ;;  %2582 = vmatprep.subr.bf16.mxu0 %v2807_v32 }
 0x286   : > { %1008 = vadd.xlane.f32.xlu1 %v3921_v48  ;;  %1010 = vadd.xlane.f32.xlu0 %v3923_v12 }
 0x287   : > { %v3927_v23 = vpop.eup %2880 }
 0x288   : > { %2583 = vmatpush3.bf16.msra.mxu0 %v2807_v32 }
 0x289   : > { %v3929_v1 = vpop.eup %2882  ;;  %2584 = vmatprep.subr.bf16.mxu0 %v2808_v15 }
 0x28a   : > { %1012 = vadd.xlane.f32.xlu1 %v3927_v23  ;;  %1014 = vadd.xlane.f32.xlu0 %v3929_v1 }
 0x28b   : > { %v3933_v25 = vpop.eup %2884 }
 0x28c   : > { %2585 = vmatpush3.bf16.msra.mxu0 %v2808_v15 }
 0x28d   : > { %v3935_v52 = vpop.eup %2886 }
 0x28e   : > { %1016 = vadd.xlane.f32.xlu1 %v3933_v25  ;;  %1018 = vadd.xlane.f32.xlu0 %v3935_v52 }
 0x28f   : > { %v3939_v13 = vpop.eup %2888 }
 0x292   : > { %1020 = vadd.xlane.f32.xlu1 %v3939_v13 }
 0x2df   : > { %v959_v33 = vpop.xlane.xlu0 %958 }
 0x2e0   : > { %2890 = vrcp.f32 %v959_v33 }
 0x2e3   : > { %v961_v34 = vpop.xlane.xlu1 %960  ;;  %v963_v37 = vpop.xlane.xlu0 %962 }
 0x2e4   : > { %2892 = vrcp.f32 %v961_v34 }
 0x2e5   : > { %2894 = vrcp.f32 %v963_v37 }
 0x2e7   : > { %v965_v16 = vpop.xlane.xlu1 %964  ;;  %v967_v24 = vpop.xlane.xlu0 %966 }
 0x2e8   : > { %2896 = vrcp.f32 %v965_v16 }
 0x2e9   : > { %2898 = vrcp.f32 %v967_v24 }
 0x2ea   : > { %v2891_v41 = vpop.eup %2890 }
 0x2eb   : > { %v1054_v17 = vmul.f32 %v2891_v41, %v959_v33  ;;  %v969_v5 = vpop.xlane.xlu1 %968  ;;  %v971_v43 = vpop.xlane.xlu0 %970 }
 0x2ec   : > { %2900 = vrcp.f32 %v969_v5 }
 0x2ed   : > { %v1086_v7 = vsub.f32 2.0, %v1054_v17  ;;  %2902 = vrcp.f32 %v971_v43 }
 0x2ee   : > { %v2893_v46 = vpop.eup %2892 }
 0x2ef   : > { %v2895_v18 = vpop.eup %2894  ;;  %v1055_v8 = vmul.f32 %v2893_v46, %v961_v34  ;;  %v973_v49 = vpop.xlane.xlu1 %972  ;;  %v1118_v35 = vmul.f32 %v2891_v41, %v1086_v7 }
 0x2f0   : > { %v975_v19 = vpop.xlane.xlu0 %974  ;;  %v1056_v36 = vmul.f32 %v2895_v18, %v963_v37  ;;  %2904 = vrcp.f32 %v973_v49 }
 0x2f1   : > { %v1087_v20 = vsub.f32 2.0, %v1055_v8  ;;  %2906 = vrcp.f32 %v975_v19  ;;  %v1150_v57 = vmul.f32 %v3814_v53, %v1118_v35 }
 0x2f2   : > { %v2897_v54 = vpop.eup %2896  ;;  %v1088_v10 = vsub.f32 2.0, %v1056_v36 }
 0x2f3   : > { %v2899_v21 = vpop.eup %2898  ;;  %v1119_v45 = vmul.f32 %v2893_v46, %v1087_v20  ;;  %v1057_v58 = vmul.f32 %v2897_v54, %v965_v16  ;;  %v977_v62 = vpop.xlane.xlu1 %976 }
 0x2f4   : > { %v979_v22 = vpop.xlane.xlu0 %978  ;;  %v1058_v4 = vmul.f32 %v2899_v21, %v967_v24  ;;  %2908 = vrcp.f32 %v977_v62  ;;  %v1120_v27 = vmul.f32 %v2895_v18, %v1088_v10 }
 0x2f5   : > { %v1089_v14 = vsub.f32 2.0, %v1057_v58  ;;  %2910 = vrcp.f32 %v979_v22  ;;  %v1151_v30 = vmul.f32 %v3821_v61, %v1119_v45 }
 0x2f6   : > { %v2901_v32 = vpop.eup %2900  ;;  %v1090_v15 = vsub.f32 2.0, %v1058_v4  ;;  %v1152_v24 = vmul.f32 %v3819_v56, %v1120_v27 }
 0x2f7   : > { %v2903_v33 = vpop.eup %2902  ;;  %v1121_v34 = vmul.f32 %v2897_v54, %v1089_v14  ;;  %v1059_v37 = vmul.f32 %v2901_v32, %v969_v5  ;;  %v981_v41 = vpop.xlane.xlu1 %980  ;;  %v1182_v16 = vpack.c.bf16 %v1151_v30, %v1150_v57 }
 0x2f8   : > { %v983_v17 = vpop.xlane.xlu0 %982  ;;  %v1122_v7 = vmul.f32 %v2899_v21, %v1090_v15  ;;  %v1060_v46 = vmul.f32 %v2903_v33, %v971_v43  ;;  %2912 = vrcp.f32 %v981_v41 }
 0x2f9   : > { %v1153_v53 = vmul.f32 %v3827_v2, %v1121_v34  ;;  %v1091_v18 = vsub.f32 2.0, %v1059_v37  ;;  %2914 = vrcp.f32 %v983_v17  ;;  %2313 = vst [vmem:[%s3948_s17] sm:$0xff] %v1182_v16   ;;  %2540 = vmatprep.mubr.bf16.mxu1 %v1182_v16 }
 0x2fa   : > { %v2905_v61 = vpop.eup %2904  ;;  %v1092_v5 = vsub.f32 2.0, %v1060_v46  ;;  %v1154_v2 = vmul.f32 %v3829_v3, %v1122_v7 }
 0x2fb   : > { %v2907_v8 = vpop.eup %2906  ;;  %v1183_v35 = vpack.c.bf16 %v1153_v53, %v1152_v24  ;;  %v1123_v36 = vmul.f32 %v2901_v32, %v1091_v18  ;;  %v1061_v43 = vmul.f32 %v2905_v61, %v973_v49  ;;  %v985_v20 = vpop.xlane.xlu1 %984 }
 0x2fc   : > { %v987_v54 = vpop.xlane.xlu0 %986  ;;  %v1062_v56 = vmul.f32 %v2907_v8, %v975_v19  ;;  %2916 = vrcp.f32 %v985_v20  ;;  %v1124_v10 = vmul.f32 %v2903_v33, %v1092_v5 }
 0x2fd   : > { %2389 = vst [vmem:[%s3948_s17 + $0x8] sm:$0xff] %v1183_v35   ;;  %v1093_v21 = vsub.f32 2.0, %v1061_v43  ;;  %2918 = vrcp.f32 %v987_v54  ;;  %2541 = vmatmul.mubr.bf16.vlgmr.msra.gmra.mrb[16].mxu1 %v1183_v35  ;;  %v1155_v45 = vmul.f32 %v3835_v59, %v1123_v36 }
 0x2fe   : > { %v2909_v58 = vpop.eup %2908  ;;  %v1094_v4 = vsub.f32 2.0, %v1062_v56  ;;  %v1156_v33 = vmul.f32 %v3837_v31, %v1124_v10 }
 0x2ff   : > { %v2911_v57 = vpop.eup %2910  ;;  %v1125_v27 = vmul.f32 %v2905_v61, %v1093_v21  ;;  %v1063_v14 = vmul.f32 %v2909_v58, %v977_v62  ;;  %v989_v49 = vpop.xlane.xlu1 %988  ;;  %v1184_v32 = vpack.c.bf16 %v1155_v45, %v1154_v2 }
 0x300   : > { %v991_v30 = vpop.xlane.xlu0 %990  ;;  %v1126_v19 = vmul.f32 %v2907_v8, %v1094_v4  ;;  %v1064_v15 = vmul.f32 %v2911_v57, %v979_v22  ;;  %2920 = vrcp.f32 %v989_v49 }
 0x301   : > { %v1095_v3 = vsub.f32 2.0, %v1063_v14  ;;  %2922 = vrcp.f32 %v991_v30  ;;  %2390 = vst [vmem:[%s3948_s17 + $0x10] sm:$0xff] %v1184_v32   ;;  %2544 = vmatprep.mubr.bf16.mxu1 %v1184_v32  ;;  %v1157_v59 = vmul.f32 %v3844_v0, %v1125_v27 }
 0x302   : > { %v2913_v34 = vpop.eup %2912  ;;  %v1096_v37 = vsub.f32 2.0, %v1064_v15  ;;  %v1158_v22 = vmul.f32 %v3846_v39, %v1126_v19 }
 0x303   : > { %v2915_v16 = vpop.eup %2914  ;;  %v1127_v7 = vmul.f32 %v2909_v58, %v1095_v3  ;;  %v1065_v62 = vmul.f32 %v2913_v34, %v981_v41  ;;  %v993_v46 = vpop.xlane.xlu1 %992  ;;  %v1185_v53 = vpack.c.bf16 %v1157_v59, %v1156_v33 }
 0x304   : > { %v995_v24 = vpop.xlane.xlu0 %994  ;;  %v1066_v18 = vmul.f32 %v2915_v16, %v983_v17  ;;  %2924 = vrcp.f32 %v993_v46  ;;  %v1128_v61 = vmul.f32 %v2911_v57, %v1096_v37 }
 0x305   : > { %v1097_v5 = vsub.f32 2.0, %v1065_v62  ;;  %2926 = vrcp.f32 %v995_v24  ;;  %2391 = vst [vmem:[%s3948_s17 + $0x18] sm:$0xff] %v1185_v53   ;;  %2545 = vmatmul.mubr.bf16.gmra.mrb[20].mxu1 %v1185_v53  ;;  %v1159_v31 = vmul.f32 %v3852_v44, %v1127_v7 }
 0x306   : > { %v2917_v0 = vpop.eup %2916  ;;  %v1098_v8 = vsub.f32 2.0, %v1066_v18  ;;  %v1160_v21 = vmul.f32 %v3855_v29, %v1128_v61 }
 0x307   : > { %v2919_v35 = vpop.eup %2918  ;;  %v1129_v36 = vmul.f32 %v2913_v34, %v1097_v5  ;;  %v1067_v41 = vmul.f32 %v2917_v0, %v985_v20  ;;  %v997_v43 = vpop.xlane.xlu1 %996  ;;  %v1186_v2 = vpack.c.bf16 %v1159_v31, %v1158_v22 }
 0x308   : > { %v999_v56 = vpop.xlane.xlu0 %998  ;;  %v1130_v17 = vmul.f32 %v2915_v16, %v1098_v8  ;;  %v1068_v10 = vmul.f32 %v2919_v35, %v987_v54  ;;  %2928 = vrcp.f32 %v997_v43 }
 0x309   : > { %v1099_v39 = vsub.f32 2.0, %v1067_v41  ;;  %2930 = vrcp.f32 %v999_v56  ;;  %2392 = vst [vmem:[%s3948_s17 + $0x20] sm:$0xff] %v1186_v2   ;;  %2548 = vmatprep.mubr.bf16.mxu1 %v1186_v2  ;;  %v1161_v44 = vmul.f32 %v3861_v51, %v1129_v36 }
 0x30a   : > { %v2921_v45 = vpop.eup %2920  ;;  %v1100_v58 = vsub.f32 2.0, %v1068_v10  ;;  %v1162_v54 = vmul.f32 %v3864_v40, %v1130_v17 }
 0x30b   : > { %v2923_v4 = vpop.eup %2922  ;;  %v1131_v57 = vmul.f32 %v2917_v0, %v1099_v39  ;;  %v1069_v20 = vmul.f32 %v2921_v45, %v989_v49  ;;  %v1001_v27 = vpop.xlane.xlu1 %1000  ;;  %v1187_v32 = vpack.c.bf16 %v1161_v44, %v1160_v21 }
 0x30c   : > { %v1003_v14 = vpop.xlane.xlu0 %1002  ;;  %v1070_v19 = vmul.f32 %v2923_v4, %v991_v30  ;;  %2932 = vrcp.f32 %v1001_v27  ;;  %v1132_v15 = vmul.f32 %v2919_v35, %v1100_v58 }
 0x30d   : > { %v1101_v3 = vsub.f32 2.0, %v1069_v20  ;;  %2934 = vrcp.f32 %v1003_v14  ;;  %2393 = vst [vmem:[%s3948_s17 + $0x28] sm:$0xff] %v1187_v32   ;;  %2549 = vmatmul.mubr.bf16.gmra.mrb[24].mxu1 %v1187_v32  ;;  %v1163_v29 = vmul.f32 %v3870_v47, %v1131_v57 }
 0x30e   : > { %v2925_v51 = vpop.eup %2924  ;;  %v1102_v33 = vsub.f32 2.0, %v1070_v19  ;;  %v1164_v53 = vmul.f32 %v3873_v63, %v1132_v15 }
 0x30f   : > { %v2927_v59 = vpop.eup %2926  ;;  %v1133_v34 = vmul.f32 %v2921_v45, %v1101_v3  ;;  %v1071_v49 = vmul.f32 %v2925_v51, %v993_v46  ;;  %v1005_v37 = vpop.xlane.xlu1 %1004  ;;  %v1188_v7 = vpack.c.bf16 %v1163_v29, %v1162_v54 }
 0x310   : > { %v1007_v16 = vpop.xlane.xlu0 %1006  ;;  %v1134_v30 = vmul.f32 %v2923_v4, %v1102_v33  ;;  %v1072_v62 = vmul.f32 %v2927_v59, %v995_v24  ;;  %2936 = vrcp.f32 %v1005_v37 }
 0x311   : > { %v1103_v40 = vsub.f32 2.0, %v1071_v49  ;;  %2938 = vrcp.f32 %v1007_v16  ;;  %2394 = vst [vmem:[%s3948_s17 + $0x30] sm:$0xff] %v1188_v7   ;;  %2552 = vmatprep.mubr.bf16.mxu1 %v1188_v7  ;;  %v1165_v47 = vmul.f32 %v3879_v6, %v1133_v34 }
 0x312   : > { %v2929_v18 = vpop.eup %2928  ;;  %v1104_v22 = vsub.f32 2.0, %v1072_v62  ;;  %v1166_v24 = vmul.f32 %v3882_v28, %v1134_v30 }
 0x313   : > { %v2931_v61 = vpop.eup %2930  ;;  %v1135_v5 = vmul.f32 %v2925_v51, %v1103_v40  ;;  %v1073_v46 = vmul.f32 %v2929_v18, %v997_v43  ;;  %v1009_v31 = vpop.xlane.xlu1 %1008  ;;  %v1189_v8 = vpack.c.bf16 %v1165_v47, %v1164_v53 }
 0x314   : > { %v1011_v0 = vpop.xlane.xlu0 %1010  ;;  %v1074_v35 = vmul.f32 %v2931_v61, %v999_v56  ;;  %2940 = vrcp.f32 %v1009_v31  ;;  %v1136_v36 = vmul.f32 %v2927_v59, %v1104_v22 }
 0x315   : > { %v1105_v41 = vsub.f32 2.0, %v1073_v46  ;;  %2942 = vrcp.f32 %v1011_v0  ;;  %2395 = vst [vmem:[%s3948_s17 + $0x38] sm:$0xff] %v1189_v8   ;;  %2553 = vmatmul.mubr.bf16.gmra.mrb[28].mxu1 %v1189_v8  ;;  %v1167_v63 = vmul.f32 %v3888_v60, %v1135_v5 }
 0x316   : > { %v2933_v6 = vpop.eup %2932  ;;  %v1106_v2 = vsub.f32 2.0, %v1074_v35  ;;  %v1168_v58 = vmul.f32 %v3891_v38, %v1136_v36 }
 0x317   : > { %v2935_v17 = vpop.eup %2934  ;;  %v1137_v10 = vmul.f32 %v2929_v18, %v1105_v41  ;;  %v1075_v43 = vmul.f32 %v2933_v6, %v1001_v27  ;;  %v1013_v39 = vpop.xlane.xlu1 %1012  ;;  %v1190_v44 = vpack.c.bf16 %v1167_v63, %v1166_v24 }
 0x318   : > { %v1015_v21 = vpop.xlane.xlu0 %1014  ;;  %v1138_v56 = vmul.f32 %v2931_v61, %v1106_v2  ;;  %v1076_v45 = vmul.f32 %v2935_v17, %v1003_v14  ;;  %2944 = vrcp.f32 %v1013_v39 }
 0x319   : > { %v1107_v28 = vsub.f32 2.0, %v1075_v43  ;;  %2946 = vrcp.f32 %v1015_v21  ;;  %2396 = vst [vmem:[%s3948_s17 + $0x40] sm:$0xff] %v1190_v44   ;;  %2556 = vmatprep.mubr.bf16.mxu1 %v1190_v44  ;;  %v1169_v60 = vmul.f32 %v3897_v42, %v1137_v10 }
 0x31a   : > { %v2937_v4 = vpop.eup %2936  ;;  %v1108_v57 = vsub.f32 2.0, %v1076_v45  ;;  %v1170_v14 = vmul.f32 %v3900_v26, %v1138_v56 }
 0x31b   : > { %v2939_v20 = vpop.eup %2938  ;;  %v1139_v32 = vmul.f32 %v2933_v6, %v1107_v28  ;;  %v1077_v27 = vmul.f32 %v2937_v4, %v1005_v37  ;;  %v1017_v19 = vpop.xlane.xlu1 %1016  ;;  %v1191_v15 = vpack.c.bf16 %v1169_v60, %v1168_v58 }
 0x31c   : > { %v1019_v54 = vpop.xlane.xlu0 %1018  ;;  %v1078_v3 = vmul.f32 %v2939_v20, %v1007_v16  ;;  %2948 = vrcp.f32 %v1017_v19  ;;  %v1140_v29 = vmul.f32 %v2935_v17, %v1108_v57  ;;  %v2809_v57 = vld [vmem:[#allocation8 + $0x38] sm:$0xff]  }
 0x31d   : > { %v1109_v51 = vsub.f32 2.0, %v1077_v27  ;;  %2950 = vrcp.f32 %v1019_v54  ;;  %2397 = vst [vmem:[%s3948_s17 + $0x48] sm:$0xff] %v1191_v15   ;;  %2557 = vmatmul.mubr.bf16.gmra.mrb[32].mxu1 %v1191_v15  ;;  %v1171_v38 = vmul.f32 %v3906_v50, %v1139_v32  ;;  %2586 = vmatprep.subr.bf16.mxu0 %v2809_v57 }
 0x31e   : > { %v2941_v42 = vpop.eup %2940  ;;  %v1110_v33 = vsub.f32 2.0, %v1078_v3  ;;  %v1172_v62 = vmul.f32 %v3908_v9, %v1140_v29  ;;  %2587 = vmatpush3.bf16.msra.mxu0 %v2809_v57 }
 0x31f   : > { %v2943_v59 = vpop.eup %2942  ;;  %v1141_v34 = vmul.f32 %v2937_v4, %v1109_v51  ;;  %v1079_v49 = vmul.f32 %v2941_v42, %v1009_v31  ;;  %v1021_v37 = vpop.xlane.xlu1 %1020  ;;  %v1192_v7 = vpack.c.bf16 %v1171_v38, %v1170_v14 }
 0x320   : > { %v1080_v30 = vmul.f32 %v2943_v59, %v1011_v0  ;;  %2952 = vrcp.f32 %v1021_v37  ;;  %v1142_v16 = vmul.f32 %v2939_v20, %v1110_v33 }
 0x321   : > { %v1111_v26 = vsub.f32 2.0, %v1079_v49  ;;  %2398 = vst [vmem:[%s3948_s17 + $0x50] sm:$0xff] %v1192_v7   ;;  %2560 = vmatprep.mubr.bf16.mxu1 %v1192_v7  ;;  %v1173_v40 = vmul.f32 %v3914_v55, %v1141_v34 }
 0x322   : > { %v2945_v53 = vpop.eup %2944  ;;  %v1112_v50 = vsub.f32 2.0, %v1080_v30  ;;  %v1174_v0 = vmul.f32 %v3916_v11, %v1142_v16 }
 0x323   : > { %v2947_v47 = vpop.eup %2946  ;;  %v1143_v18 = vmul.f32 %v2941_v42, %v1111_v26  ;;  %v1081_v22 = vmul.f32 %v2945_v53, %v1013_v39  ;;  %v1193_v61 = vpack.c.bf16 %v1173_v40, %v1172_v62 }
 0x324   : > { %v1082_v5 = vmul.f32 %v2947_v47, %v1015_v21  ;;  %v1144_v46 = vmul.f32 %v2943_v59, %v1112_v50 }
 0x325   : > { %v1113_v31 = vsub.f32 2.0, %v1081_v22  ;;  %2399 = vst [vmem:[%s3948_s17 + $0x58] sm:$0xff] %v1193_v61   ;;  %2561 = vmatmul.mubr.bf16.gmra.mrb[36].mxu1 %v1193_v61  ;;  %v1175_v8 = vmul.f32 %v3921_v48, %v1143_v18 }
 0x326   : > { %v2949_v35 = vpop.eup %2948  ;;  %v1114_v9 = vsub.f32 2.0, %v1082_v5  ;;  %v1176_v17 = vmul.f32 %v3923_v12, %v1144_v46 }
 0x327   : > { %v2951_v24 = vpop.eup %2950  ;;  %v1145_v55 = vmul.f32 %v2945_v53, %v1113_v31  ;;  %v1083_v36 = vmul.f32 %v2949_v35, %v1017_v19  ;;  %v1194_v41 = vpack.c.bf16 %v1175_v8, %v1174_v0 }
 0x328   : > { %v1084_v63 = vmul.f32 %v2951_v24, %v1019_v54  ;;  %v1146_v6 = vmul.f32 %v2947_v47, %v1114_v9 }
 0x329   : > { %v1115_v2 = vsub.f32 2.0, %v1083_v36  ;;  %2400 = vst [vmem:[%s3948_s17 + $0x60] sm:$0xff] %v1194_v41   ;;  %2564 = vmatprep.mubr.bf16.mxu1 %v1194_v41  ;;  %v1177_v10 = vmul.f32 %v3927_v23, %v1145_v55 }
 0x32a   : > { %v2953_v11 = vpop.eup %2952  ;;  %v1116_v43 = vsub.f32 2.0, %v1084_v63  ;;  %v1178_v45 = vmul.f32 %v3929_v1, %v1146_v6 }
 0x32b   : > { %v1147_v48 = vmul.f32 %v2949_v35, %v1115_v2  ;;  %v1085_v39 = vmul.f32 %v2953_v11, %v1021_v37  ;;  %v1195_v21 = vpack.c.bf16 %v1177_v10, %v1176_v17 }
 0x32c   : > { %v1148_v44 = vmul.f32 %v2951_v24, %v1116_v43 }
 0x32d   : > { %v1117_v56 = vsub.f32 2.0, %v1085_v39  ;;  %2401 = vst [vmem:[%s3948_s17 + $0x68] sm:$0xff] %v1195_v21   ;;  %2565 = vmatmul.mubr.bf16.gmra.mrb[40].mxu1 %v1195_v21  ;;  %v1179_v28 = vmul.f32 %v3933_v25, %v1147_v48 }
 0x32e   : > { %v1180_v12 = vmul.f32 %v3935_v52, %v1148_v44 }
 0x32f   : > { %v1149_v58 = vmul.f32 %v2953_v11, %v1117_v56  ;;  %v1196_v60 = vpack.c.bf16 %v1179_v28, %v1178_v45 }
 0x331   : > { %v1181_v23 = vmul.f32 %v3939_v13, %v1149_v58  ;;  %2402 = vst [vmem:[%s3948_s17 + $0x70] sm:$0xff] %v1196_v60   ;;  %2568 = vmatprep.mubr.bf16.mxu1 %v1196_v60 }
 0x333   : > { %v1197_v4 = vpack.c.bf16 %v1181_v23, %v1180_v12 }
 0x335   : > { %2403 = vst [vmem:[%s3948_s17 + $0x78] sm:$0xff] %v1197_v4   ;;  %2569 = vmatmul.mubr.bf16.gmra.mrb[44].mxu1 %v1197_v4 }
 0x3d0   : > { %v2542_v20 = vpop.f32.mrb[16].mxu1 }
 0x3d1   : > { %v1440_v32 = vpop.f32.mrb[17].mxu1 }
 0x3d2   : > { %v2543_v27 = vpop.f32.mrb[18].mxu1 }
 0x3d3   : > { %v1568_v1 = vpack.c.bf16 %v2543_v27, %v2542_v20  ;;  %v1443_v19 = vpop.f32.mrb[19].mxu1 }
 0x3d4   : > { %v1567_v25 = vpack.c.bf16 %v1443_v19, %v1440_v32 }
 0x3d6   : > { %2588 = vmatprep.mubr.bf16.mxu0 %v1567_v25 }
 0x3d7   : > { %2589 = vmatmul.mubr.bf16.vlgmr.msra.gmra.mrb[16].mxu0 %v1568_v1 }
 0x3d8   : > { %v2546_v54 = vpop.f32.mrb[20].mxu1 }
 0x3d9   : > { %v1456_v52 = vpop.f32.mrb[21].mxu1 }
 0x3da   : > { %v2547_v15 = vpop.f32.mrb[22].mxu1 }
 0x3db   : > { %v1570_v13 = vpack.c.bf16 %v2547_v15, %v2546_v54  ;;  %v1459_v3 = vpop.f32.mrb[23].mxu1 }
 0x3dc   : > { %v1569_v14 = vpack.c.bf16 %v1459_v3, %v1456_v52 }
 0x3de   : > { %2592 = vmatprep.mubr.bf16.mxu0 %v1569_v14 }
 0x3df   : > { %2593 = vmatmul.mubr.bf16.gmra.mrb[20].mxu0 %v1570_v13 }
 0x3e0   : > { %v2550_v29 = vpop.f32.mrb[24].mxu1 }
 0x3e1   : > { %v1472_v51 = vpop.f32.mrb[25].mxu1 }
 0x3e2   : > { %v2551_v38 = vpop.f32.mrb[26].mxu1 }
 0x3e3   : > { %v1572_v42 = vpack.c.bf16 %v2551_v38, %v2550_v29  ;;  %v1475_v33 = vpop.f32.mrb[27].mxu1 }
 0x3e4   : > { %v1571_v59 = vpack.c.bf16 %v1475_v33, %v1472_v51 }
 0x3e6   : > { %2596 = vmatprep.mubr.bf16.mxu0 %v1571_v59 }
 0x3e7   : > { %2597 = vmatmul.mubr.bf16.gmra.mrb[24].mxu0 %v1572_v42 }
 0x3e8   : > { %v2554_v34 = vpop.f32.mrb[28].mxu1 }
 0x3e9   : > { %v1488_v49 = vpop.f32.mrb[29].mxu1 }
 0x3ea   : > { %v2555_v37 = vpop.f32.mrb[30].mxu1 }
 0x3eb   : > { %v1574_v7 = vpack.c.bf16 %v2555_v37, %v2554_v34  ;;  %v1491_v30 = vpop.f32.mrb[31].mxu1 }
 0x3ec   : > { %v1573_v16 = vpack.c.bf16 %v1491_v30, %v1488_v49 }
 0x3ee   : > { %2600 = vmatprep.mubr.bf16.mxu0 %v1573_v16 }
 0x3ef   : > { %2601 = vmatmul.mubr.bf16.gmra.mrb[28].mxu0 %v1574_v7 }
 0x3f0   : > { %v2558_v26 = vpop.f32.mrb[32].mxu1 }
 0x3f1   : > { %v1504_v62 = vpop.f32.mrb[33].mxu1 }
 0x3f2   : > { %v2559_v40 = vpop.f32.mrb[34].mxu1 }
 0x3f3   : > { %v1576_v53 = vpack.c.bf16 %v2559_v40, %v2558_v26  ;;  %v1507_v50 = vpop.f32.mrb[35].mxu1 }
 0x3f4   : > { %v1575_v47 = vpack.c.bf16 %v1507_v50, %v1504_v62 }
 0x3f6   : > { %2604 = vmatprep.mubr.bf16.mxu0 %v1575_v47 }
 0x3f7   : > { %2605 = vmatmul.mubr.bf16.gmra.mrb[32].mxu0 %v1576_v53 }
 0x3f8   : > { %v2562_v18 = vpop.f32.mrb[36].mxu1 }
 0x3f9   : > { %v1520_v22 = vpop.f32.mrb[37].mxu1 }
 0x3fa   : > { %v2563_v61 = vpop.f32.mrb[38].mxu1 }
 0x3fb   : > { %v1578_v5 = vpack.c.bf16 %v2563_v61, %v2562_v18  ;;  %v1523_v46 = vpop.f32.mrb[39].mxu1 }
 0x3fc   : > { %v1577_v31 = vpack.c.bf16 %v1523_v46, %v1520_v22 }
 0x3fe   : > { %2608 = vmatprep.mubr.bf16.mxu0 %v1577_v31 }
 0x3ff   : > { %2609 = vmatmul.mubr.bf16.gmra.mrb[36].mxu0 %v1578_v5 }
 0x400   : > { %v2566_v0 = vpop.f32.mrb[40].mxu1 }
 0x401   : > { %v1536_v8 = vpop.f32.mrb[41].mxu1 }
 0x402   : > { %v2567_v35 = vpop.f32.mrb[42].mxu1 }
 0x403   : > { %v1580_v9 = vpack.c.bf16 %v2567_v35, %v2566_v0  ;;  %v1539_v24 = vpop.f32.mrb[43].mxu1 }
 0x404   : > { %v1579_v55 = vpack.c.bf16 %v1539_v24, %v1536_v8 }
 0x406   : > { %2612 = vmatprep.mubr.bf16.mxu0 %v1579_v55 }
 0x407   : > { %2613 = vmatmul.mubr.bf16.gmra.mrb[40].mxu0 %v1580_v9 }
 0x408   : > { %v2570_v36 = vpop.f32.mrb[44].mxu1 }
 0x409   : > { %v1552_v41 = vpop.f32.mrb[45].mxu1 }
 0x40a   : > { %v2571_v63 = vpop.f32.mrb[46].mxu1 }
 0x40b   : > { %v1582_v6 = vpack.c.bf16 %v2571_v63, %v2570_v36  ;;  %v1555_v2 = vpop.f32.mrb[47].mxu1 }
 0x40c   : > { %v1581_v17 = vpack.c.bf16 %v1555_v2, %v1552_v41 }
 0x40e   : > { %2616 = vmatprep.mubr.bf16.mxu0 %v1581_v17 }
 0x40f   : > { %2617 = vmatmul.mubr.bf16.gmra.mrb[44].mxu0 %v1582_v6 }
 0x410   : > { %3101 = shalt.err (!%p3098_p10)
}
 0x411   : > { %s3102_s18 = scalar_lea.hbm %s4003_s9, 2048  ;;  %s3106_s3 = scalar_lea.hbm %s4289_s22, 8192 }
 0x412   : > { %p3103_p8 = scmp.ne.s32.totalorder %s4003_s9, %s3102_s18  ;;  %p3107_p2 = scmp.lt.u32.totalorder %s4003_s9, %s4289_s22 }
 0x413   : > { %p3108_p6 = scmp.lt.u32.totalorder %s3106_s3, %s3102_s18  ;;  %p3110_p4 = scmp.lt.u32.totalorder %s3102_s18, %s4003_s9 }
 0x414   : > { %p3104_p12 = pnand %p3103_p8, %p4290_p1 }
 0x415   : > { %p3109_p0 = por %p3108_p6, %p3107_p2 }
 0x416   : > { %p3105_p7 = pneg %p3104_p12 }
 0x417   : > { %p3111_p5 = por %p3110_p4, %p3109_p0 }
 0x419   : > { %p3112_p9 = pnand %p3111_p5, %p3105_p7 }
 0x41b   : > { %3115 = shalt.err (!%p3112_p9)
}
 0x41c   : > { %s3259_s24 = smov 64   ;;  %s3260_s5 = smov 4   ;;  %v2954_v10 = vld [vmem:[%s3624_s7 + $0x8] sm:$0xff]   ;;  %v2955_v43 = vld [vmem:[%s3624_s7] sm:$0xff]   ;;  %v2956_v1 = vld [vmem:[%s3624_s7 + $0x18] sm:$0xff]  }
 0x41d   : > { %2647 = dma.vmem_to_hbm [thread:$0]  (%p4290_p1), %s4005_s1, 2048, %s4003_s9, %s1949_s23, %s3259_s24, %s3259_s24, %s3260_s5   ;;  %v1817_v11 = vunpack.c.l.bf16 %v2954_v10  ;;  %v1815_v48 = vunpack.c.l.bf16 %v2955_v43  ;;  %v1818_v39 = vunpack.c.h.bf16 %v2954_v10  ;;  %v1816_v21 = vunpack.c.h.bf16 %v2955_v43 }
 0x41e   : > { %s4291_s25 = sld [smem:[#allocation33_spill]]  ;;  %s2189_s4 = sshll.u32 %s3618_s14, 8  ;;  %v1821_v19 = vunpack.c.l.bf16 %v2956_v1  ;;  %v2957_v52 = vld [vmem:[%s3624_s7 + $0x10] sm:$0xff]   ;;  %v1822_v3 = vunpack.c.h.bf16 %v2956_v1  ;;  %v2958_v62 = vld [vmem:[%s3624_s7 + $0x28] sm:$0xff]   ;;  %v2959_v47 = vld [vmem:[%s3624_s7 + $0x20] sm:$0xff]  }
 0x41f   : > { %v1849_v56 = vmul.f32 0.70710677, %v1817_v11  ;;  %v1847_v45 = vmul.f32 0.70710677, %v1815_v48  ;;  %v1850_v12 = vmul.f32 0.70710677, %v1818_v39  ;;  %v1819_v15 = vunpack.c.l.bf16 %v2957_v52 }
 0x420   : > { %v1848_v23 = vmul.f32 0.70710677, %v1816_v21  ;;  %s4045_s1 = scalar_lea.vmem [#allocation10], %s2189_s4  ;;  %v1820_v29 = vunpack.c.h.bf16 %v2957_v52  ;;  %v1853_v51 = vmul.f32 0.70710677, %v1821_v19  ;;  %v1825_v40 = vunpack.c.l.bf16 %v2958_v62  ;;  %v2960_v17 = vld [vmem:[%s3624_s7 + $0x38] sm:$0xff]  }
 0x421   : > { %v1851_v42 = vmul.f32 0.70710677, %v1819_v15  ;;  %v1854_v34 = vmul.f32 0.70710677, %v1822_v3  ;;  %v1823_v18 = vunpack.c.l.bf16 %v2959_v47  ;;  %v1826_v61 = vunpack.c.h.bf16 %v2958_v62  ;;  %v2961_v48 = vld [vmem:[%s3624_s7 + $0x30] sm:$0xff]   ;;  %v2963_v15 = vld [vmem:[%s3624_s7 + $0x40] sm:$0xff]  }
 0x422   : > { %v1852_v7 = vmul.f32 0.70710677, %v1820_v29  ;;  %v1824_v46 = vunpack.c.h.bf16 %v2959_v47  ;;  %v1857_v31 = vmul.f32 0.70710677, %v1825_v40  ;;  %v1829_v10 = vunpack.c.l.bf16 %v2960_v17  ;;  %s1964_s9 = sshll.u32 %s4045_s1, 4  ;;  %s4292_s12 = sld [smem:[#allocation34_spill]]  ;;  %s4123_s9 = int_to_ptr.vmem [resolvable:$true] %s1964_s9 }
 0x423   : > { %v1855_v8 = vmul.f32 0.70710677, %v1823_v18  ;;  %v1858_v24 = vmul.f32 0.70710677, %v1826_v61  ;;  %v1827_v39 = vunpack.c.l.bf16 %v2961_v48  ;;  %v2965_v61 = vld [vmem:[%s3624_s7 + $0x50] sm:$0xff]   ;;  %s3116_s19 = scalar_lea.vmem %s4123_s9, 4096 }
 0x424   : > { %v4036_v44 = vld [vmem:[%s4291_s25] ss:$0 sm:$0xff]  ;;  %v1856_v41 = vmul.f32 0.70710677, %v1824_v46  ;;  %p3117_p11 = scmp.ne.s32.totalorder %s4123_s9, %s3116_s19  ;;  %s3261_s17 = smov [#allocation10]  }
 0x425   : > { %s3120_s3 = sshll.u32 %s3261_s17, 4  ;;  %s3121_s3 = int_to_ptr.vmem [resolvable:$false] %s3120_s3 }
 0x426   : > { %p3118_p13 = pnand %p3117_p11, %p4290_p1  ;;  %s3122_s21 = scalar_lea.vmem %s3121_s3, 8192 }
 0x427   : > { %p3123_p10 = scmp.lt.s32.totalorder %s4123_s9, %s3121_s3  ;;  %p3124_p8 = scmp.lt.s32.totalorder %s3122_s21, %s3116_s19 }
 0x428   : > { %p3119_p3 = pneg %p3118_p13 }
 0x429   : > { %p3125_p12 = por %p3124_p8, %p3123_p10 }
 0x42b   : > { %p3126_p7 = pnand %p3125_p12, %p3119_p3 }
 0x4aa   : > { %v2590_v28 = vpop.f32.mrb[16].mxu0 }
 0x4ab   : > { %v1697_v58 = vadd.f32 %v2590_v28, %v4036_v44  ;;  %v1688_v60 = vpop.f32.mrb[17].mxu0  ;;  %v1828_v28 = vunpack.c.h.bf16 %v2961_v48 }
 0x4ac   : > { %v1689_v4 = vadd.f32 %v4036_v44, %v1688_v60  ;;  %v2591_v57 = vpop.f32.mrb[18].mxu0 }
 0x4ad   : > { %v1881_v20 = vadd.f32 %v1849_v56, %v1697_v58  ;;  %v1700_v32 = vadd.f32 %v2591_v57, %v4036_v44  ;;  %v1691_v27 = vpop.f32.mrb[19].mxu0  ;;  %v1830_v56 = vunpack.c.h.bf16 %v2960_v17  ;;  %v1861_v58 = vmul.f32 0.70710677, %v1829_v10 }
 0x4ae   : > { %v1879_v25 = vadd.f32 %v1847_v45, %v1689_v4  ;;  %v1692_v54 = vadd.f32 %v4036_v44, %v1691_v27  ;;  %v1860_v27 = vmul.f32 0.70710677, %v1828_v28 }
 0x4af   : > { %1913 = vst [vmem:[%s4045_s1 + $0x10] sm:$0xff] %v1881_v20  ;;  %v1882_v13 = vadd.f32 %v1850_v12, %v1700_v32  ;;  %v1859_v12 = vmul.f32 0.70710677, %v1827_v39  ;;  %v1862_v57 = vmul.f32 0.70710677, %v1830_v56  ;;  %v2967_v56 = vld [vmem:[%s3624_s7 + $0x60] sm:$0xff]  }
 0x4b0   : > { %1911 = vst [vmem:[%s4045_s1] sm:$0xff] %v1879_v25  ;;  %v1880_v14 = vadd.f32 %v1848_v23, %v1692_v54  ;;  %v2962_v54 = vld [vmem:[%s3624_s7 + $0x48] sm:$0xff]  }
 0x4b1   : > { %1914 = vst [vmem:[%s4045_s1 + $0x18] sm:$0xff] %v1882_v13  ;;  %v1833_v52 = vunpack.c.l.bf16 %v2962_v54  ;;  %v1831_v13 = vunpack.c.l.bf16 %v2963_v15 }
 0x4b2   : > { %1912 = vst [vmem:[%s4045_s1 + $0x8] sm:$0xff] %v1880_v14  ;;  %v2594_v38 = vpop.f32.mrb[20].mxu0 }
 0x4b3   : > { %v1713_v33 = vadd.f32 %v2594_v38, %v4036_v44  ;;  %v1704_v59 = vpop.f32.mrb[21].mxu0  ;;  %v1832_v38 = vunpack.c.h.bf16 %v2963_v15 }
 0x4b4   : > { %v1705_v49 = vadd.f32 %v4036_v44, %v1704_v59  ;;  %v2595_v37 = vpop.f32.mrb[22].mxu0  ;;  %v1863_v59 = vmul.f32 0.70710677, %v1831_v13  ;;  %v2968_v13 = vld [vmem:[%s3624_s7 + $0x78] sm:$0xff]  }
 0x4b5   : > { %v1885_v30 = vadd.f32 %v1853_v51, %v1713_v33  ;;  %v1716_v16 = vadd.f32 %v2595_v37, %v4036_v44  ;;  %v1707_v26 = vpop.f32.mrb[23].mxu0  ;;  %v1834_v51 = vunpack.c.h.bf16 %v2962_v54  ;;  %v1865_v33 = vmul.f32 0.70710677, %v1833_v52 }
 0x4b6   : > { %v1883_v53 = vadd.f32 %v1851_v42, %v1705_v49  ;;  %v1708_v50 = vadd.f32 %v4036_v44, %v1707_v26 }
 0x4b7   : > { %1917 = vst [vmem:[%s4045_s1 + $0x30] sm:$0xff] %v1885_v30  ;;  %v1886_v22 = vadd.f32 %v1854_v34, %v1716_v16  ;;  %v1864_v30 = vmul.f32 0.70710677, %v1832_v38 }
 0x4b8   : > { %1915 = vst [vmem:[%s4045_s1 + $0x20] sm:$0xff] %v1883_v53  ;;  %v1884_v5 = vadd.f32 %v1852_v7, %v1708_v50  ;;  %v1866_v7 = vmul.f32 0.70710677, %v1834_v51  ;;  %v2964_v50 = vld [vmem:[%s3624_s7 + $0x58] sm:$0xff]   ;;  %v2969_v51 = vld [vmem:[%s3624_s7 + $0x70] sm:$0xff]  }
 0x4b9   : > { %1918 = vst [vmem:[%s4045_s1 + $0x38] sm:$0xff] %v1886_v22  ;;  %v1837_v47 = vunpack.c.l.bf16 %v2964_v50  ;;  %v1843_v38 = vunpack.c.l.bf16 %v2969_v51 }
 0x4ba   : > { %1916 = vst [vmem:[%s4045_s1 + $0x28] sm:$0xff] %v1884_v5  ;;  %v2598_v0 = vpop.f32.mrb[24].mxu0  ;;  %v1835_v5 = vunpack.c.l.bf16 %v2965_v61 }
 0x4bb   : > { %v1729_v35 = vadd.f32 %v2598_v0, %v4036_v44  ;;  %v1720_v9 = vpop.f32.mrb[25].mxu0 }
 0x4bc   : > { %v1721_v55 = vadd.f32 %v4036_v44, %v1720_v9  ;;  %v2599_v36 = vpop.f32.mrb[26].mxu0 }
 0x4bd   : > { %v1889_v63 = vadd.f32 %v1857_v31, %v1729_v35  ;;  %v1732_v6 = vadd.f32 %v2599_v36, %v4036_v44  ;;  %v1723_v2 = vpop.f32.mrb[27].mxu0  ;;  %v1838_v31 = vunpack.c.h.bf16 %v2964_v50  ;;  %v1869_v35 = vmul.f32 0.70710677, %v1837_v47 }
 0x4be   : > { %v1887_v11 = vadd.f32 %v1855_v8, %v1721_v55  ;;  %v1724_v43 = vadd.f32 %v4036_v44, %v1723_v2  ;;  %v1836_v8 = vunpack.c.h.bf16 %v2965_v61 }
 0x4bf   : > { %1921 = vst [vmem:[%s4045_s1 + $0x50] sm:$0xff] %v1889_v63  ;;  %v1890_v21 = vadd.f32 %v1858_v24, %v1732_v6  ;;  %v1867_v24 = vmul.f32 0.70710677, %v1835_v5 }
 0x4c0   : > { %1919 = vst [vmem:[%s4045_s1 + $0x40] sm:$0xff] %v1887_v11  ;;  %v1888_v45 = vadd.f32 %v1856_v41, %v1724_v43  ;;  %v1870_v41 = vmul.f32 0.70710677, %v1838_v31  ;;  %v1868_v2 = vmul.f32 0.70710677, %v1836_v8  ;;  %v2966_v43 = vld [vmem:[%s3624_s7 + $0x68] sm:$0xff]  }
 0x4c1   : > { %1922 = vst [vmem:[%s4045_s1 + $0x58] sm:$0xff] %v1890_v21  ;;  %v1841_v48 = vunpack.c.l.bf16 %v2966_v43  ;;  %s2269_s7 = sshll.u32 %s3996_s15, 7  ;;  %s1944_s15 = scalar_lea.sflag [#allocation4], %s3618_s14 }
 0x4c2   : > { %1920 = vst [vmem:[%s4045_s1 + $0x48] sm:$0xff] %v1888_v45  ;;  %v2602_v60 = vpop.f32.mrb[28].mxu0  ;;  %v1839_v45 = vunpack.c.l.bf16 %v2967_v56  ;;  %s4121_s18 = scalar_lea.hbm %s4292_s12, %s2269_s7 }
 0x4c3   : > { %v1745_v23 = vadd.f32 %v2602_v60, %v4036_v44  ;;  %v1736_v4 = vpop.f32.mrb[29].mxu0 }
 0x4c4   : > { %v1737_v20 = vadd.f32 %v4036_v44, %v1736_v4  ;;  %v2603_v32 = vpop.f32.mrb[30].mxu0 }
 0x4c5   : > { %v1893_v1 = vadd.f32 %v1861_v58, %v1745_v23  ;;  %v1748_v19 = vadd.f32 %v2603_v32, %v4036_v44  ;;  %v1739_v25 = vpop.f32.mrb[31].mxu0  ;;  %v1842_v58 = vunpack.c.h.bf16 %v2966_v43  ;;  %v1873_v23 = vmul.f32 0.70710677, %v1841_v48 }
 0x4c6   : > { %v1891_v3 = vadd.f32 %v1859_v12, %v1737_v20  ;;  %v1740_v14 = vadd.f32 %v4036_v44, %v1739_v25  ;;  %v1840_v12 = vunpack.c.h.bf16 %v2967_v56 }
 0x4c7   : > { %1925 = vst [vmem:[%s4045_s1 + $0x70] sm:$0xff] %v1893_v1  ;;  %v1894_v29 = vadd.f32 %v1862_v57, %v1748_v19  ;;  %v1871_v57 = vmul.f32 0.70710677, %v1839_v45 }
 0x4c8   : > { %1923 = vst [vmem:[%s4045_s1 + $0x60] sm:$0xff] %v1891_v3  ;;  %v1892_v42 = vadd.f32 %v1860_v27, %v1740_v14  ;;  %v1874_v27 = vmul.f32 0.70710677, %v1842_v58  ;;  %v1872_v25 = vmul.f32 0.70710677, %v1840_v12  ;;  %v1845_v3 = vunpack.c.l.bf16 %v2968_v13 }
 0x4c9   : > { %1926 = vst [vmem:[%s4045_s1 + $0x78] sm:$0xff] %v1894_v29 }
 0x4ca   : > { %1924 = vst [vmem:[%s4045_s1 + $0x68] sm:$0xff] %v1892_v42  ;;  %v2606_v34 = vpop.f32.mrb[32].mxu0 }
 0x4cb   : > { %v1761_v49 = vadd.f32 %v2606_v34, %v4036_v44  ;;  %v1752_v37 = vpop.f32.mrb[33].mxu0  ;;  %v1844_v34 = vunpack.c.h.bf16 %v2969_v51 }
 0x4cc   : > { %v1753_v16 = vadd.f32 %v4036_v44, %v1752_v37  ;;  %v2607_v26 = vpop.f32.mrb[34].mxu0 }
 0x4cd   : > { %v1897_v62 = vadd.f32 %v1865_v33, %v1761_v49  ;;  %v1764_v40 = vadd.f32 %v2607_v26, %v4036_v44  ;;  %v1755_v53 = vpop.f32.mrb[35].mxu0  ;;  %v1846_v33 = vunpack.c.h.bf16 %v2968_v13  ;;  %v1877_v49 = vmul.f32 0.70710677, %v1845_v3 }
 0x4ce   : > { %v1895_v18 = vadd.f32 %v1863_v59, %v1753_v16  ;;  %v1756_v22 = vadd.f32 %v4036_v44, %v1755_v53  ;;  %v1876_v53 = vmul.f32 0.70710677, %v1844_v34 }
 0x4cf   : > { %1929 = vst [vmem:[%s4045_s1 + $0x90] sm:$0xff] %v1897_v62  ;;  %v1898_v46 = vadd.f32 %v1866_v7, %v1764_v40  ;;  %v1875_v7 = vmul.f32 0.70710677, %v1843_v38  ;;  %v1878_v26 = vmul.f32 0.70710677, %v1846_v33 }
 0x4d0   : > { %1927 = vst [vmem:[%s4045_s1 + $0x80] sm:$0xff] %v1895_v18  ;;  %v1896_v0 = vadd.f32 %v1864_v30, %v1756_v22 }
 0x4d1   : > { %1930 = vst [vmem:[%s4045_s1 + $0x98] sm:$0xff] %v1898_v46 }
 0x4d2   : > { %1928 = vst [vmem:[%s4045_s1 + $0x88] sm:$0xff] %v1896_v0  ;;  %v2610_v9 = vpop.f32.mrb[36].mxu0 }
 0x4d3   : > { %v1777_v55 = vadd.f32 %v2610_v9, %v4036_v44  ;;  %v1768_v36 = vpop.f32.mrb[37].mxu0 }
 0x4d4   : > { %v1769_v63 = vadd.f32 %v4036_v44, %v1768_v36  ;;  %v2611_v6 = vpop.f32.mrb[38].mxu0 }
 0x4d5   : > { %v1901_v17 = vadd.f32 %v1869_v35, %v1777_v55  ;;  %v1780_v10 = vadd.f32 %v2611_v6, %v4036_v44  ;;  %v1771_v11 = vpop.f32.mrb[39].mxu0 }
 0x4d6   : > { %v1899_v39 = vadd.f32 %v1867_v24, %v1769_v63  ;;  %v1772_v21 = vadd.f32 %v4036_v44, %v1771_v11 }
 0x4d7   : > { %1933 = vst [vmem:[%s4045_s1 + $0xb0] sm:$0xff] %v1901_v17  ;;  %v1902_v28 = vadd.f32 %v1870_v41, %v1780_v10 }
 0x4d8   : > { %1931 = vst [vmem:[%s4045_s1 + $0xa0] sm:$0xff] %v1899_v39  ;;  %v1900_v60 = vadd.f32 %v1868_v2, %v1772_v21 }
 0x4d9   : > { %1934 = vst [vmem:[%s4045_s1 + $0xb8] sm:$0xff] %v1902_v28 }
 0x4da   : > { %1932 = vst [vmem:[%s4045_s1 + $0xa8] sm:$0xff] %v1900_v60  ;;  %v2614_v4 = vpop.f32.mrb[40].mxu0 }
 0x4db   : > { %v1793_v20 = vadd.f32 %v2614_v4, %v4036_v44  ;;  %v1784_v32 = vpop.f32.mrb[41].mxu0 }
 0x4dc   : > { %v1785_v1 = vadd.f32 %v4036_v44, %v1784_v32  ;;  %v2615_v19 = vpop.f32.mrb[42].mxu0 }
 0x4dd   : > { %v1905_v54 = vadd.f32 %v1873_v23, %v1793_v20  ;;  %v1796_v52 = vadd.f32 %v2615_v19, %v4036_v44  ;;  %v1787_v15 = vpop.f32.mrb[43].mxu0 }
 0x4de   : > { %v1903_v14 = vadd.f32 %v1871_v57, %v1785_v1  ;;  %v1788_v29 = vadd.f32 %v4036_v44, %v1787_v15 }
 0x4df   : > { %1937 = vst [vmem:[%s4045_s1 + $0xd0] sm:$0xff] %v1905_v54  ;;  %v1906_v42 = vadd.f32 %v1874_v27, %v1796_v52 }
 0x4e0   : > { %1935 = vst [vmem:[%s4045_s1 + $0xc0] sm:$0xff] %v1903_v14  ;;  %v1904_v59 = vadd.f32 %v1872_v25, %v1788_v29 }
 0x4e1   : > { %1938 = vst [vmem:[%s4045_s1 + $0xd8] sm:$0xff] %v1906_v42 }
 0x4e2   : > { %1936 = vst [vmem:[%s4045_s1 + $0xc8] sm:$0xff] %v1904_v59  ;;  %v2618_v37 = vpop.f32.mrb[44].mxu0 }
 0x4e3   : > { %v1809_v30 = vadd.f32 %v2618_v37, %v4036_v44  ;;  %v1800_v16 = vpop.f32.mrb[45].mxu0 }
 0x4e4   : > { %v1801_v62 = vadd.f32 %v4036_v44, %v1800_v16  ;;  %v2619_v40 = vpop.f32.mrb[46].mxu0 }
 0x4e5   : > { %v1909_v50 = vadd.f32 %v1877_v49, %v1809_v30  ;;  %v1812_v47 = vadd.f32 %v2619_v40, %v4036_v44  ;;  %v1803_v18 = vpop.f32.mrb[47].mxu0 }
 0x4e6   : > { %v1907_v22 = vadd.f32 %v1875_v7, %v1801_v62  ;;  %v1804_v61 = vadd.f32 %v4036_v44, %v1803_v18 }
 0x4e7   : > { %1941 = vst [vmem:[%s4045_s1 + $0xf0] sm:$0xff] %v1909_v50  ;;  %v1910_v5 = vadd.f32 %v1878_v26, %v1812_v47 }
 0x4e8   : > { %1939 = vst [vmem:[%s4045_s1 + $0xe0] sm:$0xff] %v1907_v22  ;;  %v1908_v46 = vadd.f32 %v1876_v53, %v1804_v61 }
 0x4e9   : > { %1942 = vst [vmem:[%s4045_s1 + $0xf8] sm:$0xff] %v1910_v5 }
 0x4ea   : > { %1940 = vst [vmem:[%s4045_s1 + $0xe8] sm:$0xff] %v1908_v46 }
 0x4eb   : > { %3129 = shalt.err (!%p3126_p7)
}
 0x4ec   : > { %s3130_s13 = scalar_lea.hbm %s4121_s18, 4096  ;;  %s3134_s27 = scalar_lea.hbm %s4292_s12, 16384 }
 0x4ed   : > { %p3131_p2 = scmp.ne.s32.totalorder %s4121_s18, %s3130_s13  ;;  %p3135_p4 = scmp.lt.u32.totalorder %s4121_s18, %s4292_s12 }
 0x4ee   : > { %p3136_p5 = scmp.lt.u32.totalorder %s3134_s27, %s3130_s13  ;;  %p3138_p11 = scmp.lt.u32.totalorder %s3130_s13, %s4121_s18 }
 0x4ef   : > { %p3132_p6 = pnand %p3131_p2, %p4290_p1 }
 0x4f0   : > { %p3137_p9 = por %p3136_p5, %p3135_p4 }
 0x4f1   : > { %p3133_p0 = pneg %p3132_p6 }
 0x4f2   : > { %p3139_p13 = por %p3138_p11, %p3137_p9 }
 0x4f4   : > { %p3140_p3 = pnand %p3139_p13, %p3133_p0 }
 0x4f6   : > { %3143 = shalt.err (!%p3140_p3)
}
 0x4f7   : > { %s3262_s4 = smov 128   ;;  %s3263_s1 = smov 8  }
 0x4f8   : > { %2646 = dma.vmem_to_hbm [thread:$0]  (%p4290_p1), %s4123_s9, 4096, %s4121_s18, %s1944_s15, %s3262_s4, %s3262_s4, %s3263_s1  }
 0x4f9 PF: > { %s4293_s7 = sld [smem:[#allocation19_spill]]  ;;  %s4294_s23 = sld [smem:[#allocation26_spill]] }
 0x4fa   : > { %p2674_p10 = scmp.ge.s32.totalorder %s3250_s11, 2 }
 0x4ff   : > { %s1997_s20 = sand.u32 1, %s4293_s7   ;;  %p4295_p8 = scmp.ne.s32.totalorder %s4294_s23, 0 }
 0x500   : > { %s1998_s19 = scalar_lea.sflag [#allocation4], %s1997_s20 }
 0x501   : > { %p2665_p12 = pnand %p2674_p10, %p4295_p8 }
 0x503   : > { %3201 = dma.done.wait (!%p2665_p12), %s1998_s19, 4096  }
 0x504   : > { %3203 = vsyncadd (!%p2665_p12), %s1998_s19, 4294963200  ;;  %s2007_s17 = scalar_lea.sflag [#allocation12], %s1997_s20 }
 0x505   : > { %3205 = dma.done.wait (!%p2665_p12), %s2007_s17, 2048  }
 0x506   : > { %3207 = vsyncadd (!%p2665_p12), %s2007_s17, 4294965248  ;;  %s31_s11 = sadd.s32 1, %s3250_s11   ;;  %s4296_s24 = sld [smem:[#allocation18_spill]] }
 0x507   : > { %p28_p7 = scmp.ge.s32.totalorder %s31_s11, 6   ;;  %s4297_s30 = sld [smem:[#allocation22_spill]] }
 0x508   : > { %s4298_s9 = sld [smem:[#allocation27_spill]]  ;;  %s4299_s14 = sld [smem:[#allocation29_spill]] }
 0x509   : > { %s4300_s25 = smov %s3218_s26  ;;  %s4301_s26 = smov %s3533_s6 }
 0x50a   : > { %s4302_s27 = smov %s3226_s28  ;;  %s4303_s28 = smov %s3230_s29 }
 0x50b   : > { %s4304_s29 = smov %s3538_s8  ;;  %s4305_s8 = smov %s3246_s10 }
 0x50c   :  { %30 = sbr.rel (!%p28_p7) target bundleno = 21 (0x15), region = 137 }
 0x50e   : > { %s4306_s10 = smov %s4299_s14 }
 0x513   :  { %2012 = vsyncpa [#allocation3], 1 }
 0x514   :  { %2014 = vsyncpa [#allocation3 + $0x1], 1 }
 0x515   :  { %2015 = vsyncpa [#allocation6], 1 }
 0x516   :  { %2017 = vsyncpa [#allocation6 + $0x1], 1 }
 0x517   :  { %2018 = vsyncpa [#allocation9], 1 }
 0x518   :  { %2019 = vsyncpa [#allocation4], 1 }
 0x519   :  { %2021 = vsyncpa [#allocation4 + $0x1], 1 }
 0x51a   :  { %2022 = vsyncpa [#allocation12], 1 }
 0x51b   :  { %2024 = vsyncpa [#allocation12 + $0x1], 1 }

</bundles_post_ra>
